<compile_context>
chip_gen: v6e
topology: v6e:2x2x1
jax: 0.10.0
libtpu: 0.0.40
codegen_flags: <defaults>
</compile_context>

<pallas_src>
import functools

import jax
import jax.numpy as jnp
from jax import lax
from jax.experimental import pallas as pl
from jax.experimental.pallas import tpu as pltpu

_HALF = 128   # lane width of each (even-w | odd-w) half of a conv output slab


# ---------------------------------------------------------------------------
# Fused kernel (one grid step == `tb` samples, batch folded into M everywhere)
# ---------------------------------------------------------------------------
def _make_kernel(tb):
    f32 = jnp.float32
    bf16 = jnp.bfloat16

    def dot(a, b):
        # Single-pass bf16 MXU matmul, f32 accumulation.
        return jnp.dot(a.astype(bf16), b, preferred_element_type=f32)

    def kernel(x_ref, w1_ref, b1_ref, w2_ref, b2_ref, wl1_ref, bl1_ref,
               wl2_ref, bl2_ref, wo_ref, bo_ref, o_ref):
        x = x_ref[...]                                              # (30*tb, 288) bf16
        # row layout: r = h_pos*tb + b_local, h_pos = [0,2,..,28, 1,3,..,29]

        # conv1 (3x3, 3->6, valid) + bias + relu: ONE K=288 matmul, M = 30*tb.
        # Output lanes: even-w columns in [0,128), odd-w columns in [128,256).
        y1 = jnp.maximum(dot(x, w1_ref[...]) + b1_ref[...], 0.0)    # (30*tb, 256) f32

        # pool1 (2x2): W direction = max(even-w half, odd-w half)   (tile-aligned)
        #              H direction = max(even-h row half, odd-h row half)
        m = jnp.maximum(y1[:, :_HALF], y1[:, _HALF:])               # (30*tb, 128)
        p1 = jnp.maximum(m[:15 * tb, :], m[15 * tb:, :])            # (15*tb, 128), h'-major

        # conv2 (3x3, 6->16, valid): 3 banded matmuls over H, M = 13*tb.
        acc = dot(p1[0:13 * tb, :], w2_ref[0])
        acc = acc + dot(p1[tb:14 * tb, :], w2_ref[1])
        acc = acc + dot(p1[2 * tb:15 * tb, :], w2_ref[2])
        y2 = jnp.maximum(acc + b2_ref[...], 0.0)                    # (13*tb, 256) f32

        # pool2 W direction (floor 13->6): odd-half padding lanes are zero and
        # the leftover w=12 column lands in lanes the linear1 weights zero out.
        m2 = jnp.maximum(y2[:, :_HALF], y2[:, _HALF:])              # (13*tb, 128)

        # pool2 H direction fused with the NCHW flatten + linear1:
        # 6 accumulated (tb,128)@(128,120) matmuls, one per pooled output row h.
        acc1 = None
        for h in range(6):
            p2h = jnp.maximum(m2[2 * h * tb:(2 * h + 1) * tb, :],
                              m2[(2 * h + 1) * tb:(2 * h + 2) * tb, :])
            term = dot(p2h, wl1_ref[h])
            acc1 = term if acc1 is None else acc1 + term
        h1 = jnp.maximum(acc1 + bl1_ref[...], 0.0)                  # (tb, 120)

        # linear2 + relu, then output linear.  M = tb for the whole tail.
        h2 = jnp.maximum(dot(h1, wl2_ref[...]) + bl2_ref[...], 0.0) # (tb, 84)
        o_ref[...] = dot(h2, wo_ref[...]) + bo_ref[...]             # (tb, 10)

    return kernel


# ---------------------------------------------------------------------------
# Wrapper-side operand construction (layout plumbing, all plain XLA)
# ---------------------------------------------------------------------------
def _conv_band_split(w_oihw, w_in):
    """3x3 valid conv as per-dy banded matmuls over the (W*Cin) lane dim.

    Returns (KH, W_in*Cin, 2*_HALF) where the output column for (wo, co) is
      even wo:          (wo//2)*Cout + co            (lanes [0, _HALF))
      odd  wo:  _HALF + (wo//2)*Cout + co            (lanes [_HALF, 2*_HALF))
    so the 2x2 W-direction max-pool becomes max(even half, odd half).
    """
    cout, cin, kh, kw = w_oihw.shape
    w_out = w_in - kw + 1
    k = jnp.transpose(w_oihw, (2, 3, 1, 0)).astype(jnp.float32)      # (KH, KW, Cin, Cout)
    wi = jnp.arange(w_in)[None, :, None]
    wo = jnp.arange(w_out)[None, None, :]
    dx = jnp.arange(kw)[:, None, None]
    sel = (wi == wo + dx).astype(jnp.float32)                        # (KW, W_in, W_out)
    big = jnp.einsum("xwv,yxio->ywivo", sel, k)                      # (KH, W_in, Cin, W_out, Cout)
    big = big.reshape(kh, w_in * cin, w_out * cout)                  # natural col = wo*Cout+co
    wo_idx = jnp.arange(w_out * cout) // cout
    co_idx = jnp.arange(w_out * cout) % cout
    newcol = jnp.where(wo_idx % 2 == 0,
                       (wo_idx // 2) * cout + co_idx,
                       _HALF + (wo_idx // 2) * cout + co_idx)
    out = jnp.zeros((kh, w_in * cin, 2 * _HALF), jnp.float32)
    out = out.at[:, :, newcol].set(big)
    return out


def _bias_split(b, w_out):
    """Conv bias tiled into the even/odd split lane layout -> (1, 2*_HALF) f32."""
    b = b.astype(jnp.float32)
    cout = b.shape[0]
    n_even = (w_out + 1) // 2
    n_odd = w_out // 2
    even = jnp.concatenate([jnp.tile(b, n_even),
                            jnp.zeros(_HALF - n_even * cout, jnp.float32)])
    odd = jnp.concatenate([jnp.tile(b, n_odd),
                           jnp.zeros(_HALF - n_odd * cout, jnp.float32)])
    return jnp.concatenate([even, odd]).reshape(1, 2 * _HALF)


def _prepare_operands(params):
    f32, bf16 = jnp.float32, jnp.bfloat16
    # conv1: fuse the 3 dy bands into one (288, 256) matrix (K = dy*96 + w*3 + c).
    w1 = _conv_band_split(params["conv1_w"], 32).reshape(288, 2 * _HALF).astype(bf16)
    b1 = _bias_split(params["conv1_b"], 30)
    # conv2: (3, 90, 256) banded, K padded to 128 (pool1 output lanes 90..127 are 0).
    w2 = _conv_band_split(params["conv2_w"], 15)
    w2 = jnp.pad(w2, ((0, 0), (0, _HALF - 90), (0, 0))).astype(bf16)          # (3, 128, 256)
    b2 = _bias_split(params["conv2_b"], 13)
    # linear1: PyTorch flattens NCHW (c,h,w); kernel rows are pooled h, lanes w*16+c.
    wl1 = jnp.transpose(params["l1_w"].reshape(120, 16, 6, 6),
                        (2, 3, 1, 0)).reshape(6, 96, 120)
    wl1 = jnp.pad(wl1, ((0, 0), (0, _HALF - 96), (0, 0))).astype(bf16)        # (6, 128, 120)
    bl1 = params["l1_b"].reshape(1, 120).astype(f32)
    wl2 = params["l2_w"].T.astype(bf16)                                       # (120, 84)
    bl2 = params["l2_b"].reshape(1, 84).astype(f32)
    wo = params["out_w"].T.astype(bf16)                                       # (84, 10)
    bo = params["out_b"].reshape(1, 10).astype(f32)
    return w1, b1, w2, b2, wl1, bl1, wl2, bl2, wo, bo


@functools.partial(jax.jit, static_argnames=("block_batch",))
def image_model_forward(x_nchw, params, block_batch=64):
    """Fused LeNet forward.  block_batch (multiple of 8) samples per grid step.

    Production sizing: block_batch=64..128 (v7x: keep double-buffered blocks
    under the 32 MiB scoped-VMEM default and N/block_batch >= 2 for both TCs).
    """
    f32, bf16 = jnp.float32, jnp.bfloat16
    tb = int(block_batch)
    if tb % 8 != 0:
        raise ValueError("block_batch must be a multiple of 8")
    n = x_nchw.shape[0]
    g = -(-n // tb)
    npad = g * tb

    # ---- input slab construction (pure XLA layout plumbing) ----
    x = x_nchw.astype(f32)
    if npad != n:
        x = jnp.pad(x, ((0, npad - n), (0, 0), (0, 0), (0, 0)))
    xl = jnp.transpose(x, (0, 2, 3, 1)).reshape(npad, 32, 96)            # lane = w*3+c
    # lane-concatenate the 3 dy-shifted row windows -> K=288 for conv1
    xcat = jnp.concatenate([xl[:, dy:dy + 30, :] for dy in range(3)], axis=-1)
    # even output rows first, then odd (so 2x2 H-pooling = max of two halves)
    xcat = xcat.reshape(npad, 15, 2, 288).transpose(0, 2, 1, 3).reshape(npad, 30, 288)
    # fold batch under each h-row block: kernel row = h_pos*tb + b_local
    xcat = xcat.reshape(g, tb, 30, 288).transpose(0, 2, 1, 3).reshape(g * 30 * tb, 288)
    x_in = xcat.astype(bf16)

    ops = _prepare_operands(params)

    c2 = lambda i: (0, 0)
    c3 = lambda i: (0, 0, 0)
    in_specs = [
        pl.BlockSpec((30 * tb, 288), lambda i: (i, 0)),  # x slab: tb samples / step
        pl.BlockSpec((288, 2 * _HALF), c2),              # conv1 banded weights (resident)
        pl.BlockSpec((1, 2 * _HALF), c2),                # conv1 bias (split lanes)
        pl.BlockSpec((3, _HALF, 2 * _HALF), c3),         # conv2 banded weights
        pl.BlockSpec((1, 2 * _HALF), c2),                # conv2 bias
        pl.BlockSpec((6, _HALF, 120), c3),               # linear1 per-row weight blocks
        pl.BlockSpec((1, 120), c2),                      # linear1 bias
        pl.BlockSpec((120, 84), c2),                     # linear2 weight
        pl.BlockSpec((1, 84), c2),                       # linear2 bias
        pl.BlockSpec((84, 10), c2),                      # output weight
        pl.BlockSpec((1, 10), c2),                       # output bias
    ]
    out = pl.pallas_call(
        _make_kernel(tb),
        out_shape=jax.ShapeDtypeStruct((g * tb, 10), f32),
        grid=(g,),
        in_specs=in_specs,
        out_specs=pl.BlockSpec((tb, 10), lambda i: (i, 0)),
        compiler_params=pltpu.CompilerParams(
            dimension_semantics=("parallel",)),
    )(x_in, *ops)
    return out[:n]


# ---------------------------------------------------------------------------
# Deterministic parameter init (PyTorch-convention shapes) + references
# ---------------------------------------------------------------------------
def init_params(key):
    ks = jax.random.split(key, 10)

    def rnd(k, shape, fan_in):
        return jax.random.normal(k, shape, jnp.float32) / jnp.sqrt(jnp.float32(fan_in))

    return {
        "conv1_w": rnd(ks[0], (6, 3, 3, 3), 27),
        "conv1_b": rnd(ks[1], (6,), 27),
        "conv2_w": rnd(ks[2], (16, 6, 3, 3), 54),
        "conv2_b": rnd(ks[3], (16,), 54),
        "l1_w": rnd(ks[4], (120, 576), 576),
        "l1_b": rnd(ks[5], (120,), 576),
        "l2_w": rnd(ks[6], (84, 120), 120),
        "l2_b": rnd(ks[7], (84,), 120),
        "out_w": rnd(ks[8], (10, 84), 84),
        "out_b": rnd(ks[9], (10,), 84),
    }


@functools.partial(jax.jit, static_argnames=("bf16_dots",))
def reference_forward(x, p, bf16_dots=False):
    """Pure-JAX replica of ImageModel.forward (NCHW, torch weight conventions).

    bf16_dots=True rounds every dot/conv operand to bf16 (f32 accumulation),
    matching the kernel's MXU precision exactly; False is the full-f32 path.
    """
    f32 = jnp.float32
    dn = ("NCHW", "OIHW", "NCHW")
    prec = None if bf16_dots else lax.Precision.HIGHEST
    cast = (lambda a: a.astype(jnp.bfloat16)) if bf16_dots else (lambda a: a)

    y = lax.conv_general_dilated(cast(x), cast(p["conv1_w"]), (1, 1), "VALID",
                                 dimension_numbers=dn, precision=prec,
                                 preferred_element_type=f32)
    y = jnp.maximum(y + p["conv1_b"][None, :, None, None], 0.0)
    y = lax.reduce_window(y, -jnp.inf, lax.max, (1, 1, 2, 2), (1, 1, 2, 2), "VALID")
    y = lax.conv_general_dilated(cast(y), cast(p["conv2_w"]), (1, 1), "VALID",
                                 dimension_numbers=dn, precision=prec,
                                 preferred_element_type=f32)
    y = jnp.maximum(y + p["conv2_b"][None, :, None, None], 0.0)
    y = lax.reduce_window(y, -jnp.inf, lax.max, (1, 1, 2, 2), (1, 1, 2, 2), "VALID")
    y = y.reshape(y.shape[0], -1)
    y = jnp.maximum(jnp.dot(cast(y), cast(p["l1_w"].T), precision=prec,
                            preferred_element_type=f32) + p["l1_b"], 0.0)
    y = jnp.maximum(jnp.dot(cast(y), cast(p["l2_w"].T), precision=prec,
                            preferred_element_type=f32) + p["l2_b"], 0.0)
    return jnp.dot(cast(y), cast(p["out_w"].T), precision=prec,
                   preferred_element_type=f32) + p["out_b"]


if __name__ == "__main__":
    key = jax.random.PRNGKey(0)
    pkey, xkey = jax.random.split(key)
    params = init_params(pkey)
    # Module implies CIFAR-style inputs: (N, 3, 32, 32) NCHW (576 = 16*6*6).
    N = 16
    x = jax.random.normal(xkey, (N, 3, 32, 32), jnp.float32)

    # block_batch=8 -> grid=(2,): small demo sizing; production would use 64-128.
    out = jax.block_until_ready(image_model_forward(x, params, block_batch=8))
    assert out.shape == (N, 10), out.shape

    # Structural check: reference with dot operands rounded to bf16 exactly like
    # the kernel -> should agree to ~1e-4.
    ref_bf16 = jax.block_until_ready(reference_forward(x, params, bf16_dots=True))
    # Semantics check vs the full-f32 forward; bf16 MXU operands cost ~0.2-1%
    # relative error, hence the looser tolerance.
    ref_f32 = jax.block_until_ready(reference_forward(x, params, bf16_dots=False))

    if not jnp.allclose(out, ref_bf16, rtol=5e-3, atol=5e-3):
        d = float(jnp.max(jnp.abs(out - ref_bf16)))
        raise AssertionError(f"mismatch vs matched-precision reference, max|diff|={d}")
    if not jnp.allclose(out, ref_f32, rtol=1e-1, atol=1e-1):
        d = float(jnp.max(jnp.abs(out - ref_f32)))
        raise AssertionError(f"mismatch vs f32 reference, max|diff|={d}")
    print("KERNEL_OK")
</pallas_src>

<mosaic_0001>
module attributes {stable_mosaic.version = 11 : i64} {
  func.func @kernel(%arg0: i32, %arg1: memref<240x288xbf16, #tpu.memory_space<vmem>>, %arg2: memref<288x256xbf16, #tpu.memory_space<vmem>>, %arg3: memref<1x256xf32, #tpu.memory_space<vmem>>, %arg4: memref<3x128x256xbf16, #tpu.memory_space<vmem>>, %arg5: memref<1x256xf32, #tpu.memory_space<vmem>>, %arg6: memref<6x128x120xbf16, #tpu.memory_space<vmem>>, %arg7: memref<1x120xf32, #tpu.memory_space<vmem>>, %arg8: memref<120x84xbf16, #tpu.memory_space<vmem>>, %arg9: memref<1x84xf32, #tpu.memory_space<vmem>>, %arg10: memref<84x10xbf16, #tpu.memory_space<vmem>>, %arg11: memref<1x10xf32, #tpu.memory_space<vmem>>, %arg12: memref<8x10xf32, #tpu.memory_space<vmem>>) attributes {dimension_semantics = [#tpu.dimension_semantics<parallel>], iteration_bounds = array<i64: 2>, scalar_prefetch = 0 : i64, scratch_operands = 0 : i64, tpu.core_type = #tpu.core_type<tc>, window_params = [{transform_indices = @transform_0, window_bounds = array<i64: 240, 288>}, {pipeline_mode = #tpu.pipeline_mode<synchronous>, transform_indices = @transform_1, window_bounds = array<i64: 288, 256>}, {pipeline_mode = #tpu.pipeline_mode<synchronous>, transform_indices = @transform_2, window_bounds = array<i64: 1, 256>}, {pipeline_mode = #tpu.pipeline_mode<synchronous>, transform_indices = @transform_3, window_bounds = array<i64: 3, 128, 256>}, {pipeline_mode = #tpu.pipeline_mode<synchronous>, transform_indices = @transform_4, window_bounds = array<i64: 1, 256>}, {pipeline_mode = #tpu.pipeline_mode<synchronous>, transform_indices = @transform_5, window_bounds = array<i64: 6, 128, 120>}, {pipeline_mode = #tpu.pipeline_mode<synchronous>, transform_indices = @transform_6, window_bounds = array<i64: 1, 120>}, {pipeline_mode = #tpu.pipeline_mode<synchronous>, transform_indices = @transform_7, window_bounds = array<i64: 120, 84>}, {pipeline_mode = #tpu.pipeline_mode<synchronous>, transform_indices = @transform_8, window_bounds = array<i64: 1, 84>}, {pipeline_mode = #tpu.pipeline_mode<synchronous>, transform_indices = @transform_9, window_bounds = array<i64: 84, 10>}, {pipeline_mode = #tpu.pipeline_mode<synchronous>, transform_indices = @transform_10, window_bounds = array<i64: 1, 10>}, {transform_indices = @transform_11, window_bounds = array<i64: 8, 10>}]} {
    %c0 = arith.constant 0 : index
    %c0_0 = arith.constant 0 : index
    %0 = vector.load %arg1[%c0, %c0_0] : memref<240x288xbf16, #tpu.memory_space<vmem>>, vector<240x288xbf16>
    %c0_1 = arith.constant 0 : index
    %c0_2 = arith.constant 0 : index
    %1 = vector.load %arg2[%c0_1, %c0_2] : memref<288x256xbf16, #tpu.memory_space<vmem>>, vector<288x256xbf16>
    %cst = arith.constant dense<0.000000e+00> : vector<240x256xf32>
    %2 = tpu.matmul %0, %1, %cst {dimension_numbers = #tpu.dot_dimension_numbers<[1], [0], [0], [1], [0, 0, 1, 1], [], []>} : vector<240x288xbf16>, vector<288x256xbf16>, vector<240x256xf32> -> vector<240x256xf32>
    %c0_3 = arith.constant 0 : index
    %c0_4 = arith.constant 0 : index
    %3 = vector.load %arg3[%c0_3, %c0_4] : memref<1x256xf32, #tpu.memory_space<vmem>>, vector<1x256xf32>
    %4 = vector.broadcast %3 : vector<1x256xf32> to vector<240x256xf32>
    %5 = arith.addf %2, %4 : vector<240x256xf32>
    %cst_5 = arith.constant 0.000000e+00 : f32
    %6 = vector.broadcast %cst_5 : f32 to vector<240x256xf32>
    %7 = arith.maximumf %5, %6 : vector<240x256xf32>
    %8 = vector.extract_strided_slice %7 {offsets = [0, 0], sizes = [240, 128], strides = [1, 1]} : vector<240x256xf32> to vector<240x128xf32>
    %9 = vector.extract_strided_slice %7 {offsets = [0, 128], sizes = [240, 128], strides = [1, 1]} : vector<240x256xf32> to vector<240x128xf32>
    %10 = arith.maximumf %8, %9 : vector<240x128xf32>
    %11 = vector.extract_strided_slice %10 {offsets = [0, 0], sizes = [120, 128], strides = [1, 1]} : vector<240x128xf32> to vector<120x128xf32>
    %12 = vector.extract_strided_slice %10 {offsets = [120, 0], sizes = [120, 128], strides = [1, 1]} : vector<240x128xf32> to vector<120x128xf32>
    %13 = arith.maximumf %11, %12 : vector<120x128xf32>
    %14 = vector.extract_strided_slice %13 {offsets = [0, 0], sizes = [104, 128], strides = [1, 1]} : vector<120x128xf32> to vector<104x128xf32>
    %c0_6 = arith.constant 0 : index
    %c0_7 = arith.constant 0 : index
    %c0_8 = arith.constant 0 : index
    %15 = vector.load %arg4[%c0_6, %c0_7, %c0_8] : memref<3x128x256xbf16, #tpu.memory_space<vmem>>, vector<1x128x256xbf16>
    %16 = vector.shape_cast %15 : vector<1x128x256xbf16> to vector<128x256xbf16>
    %17 = arith.truncf %14 : vector<104x128xf32> to vector<104x128xbf16>
    %cst_9 = arith.constant dense<0.000000e+00> : vector<104x256xf32>
    %18 = tpu.matmul %17, %16, %cst_9 {dimension_numbers = #tpu.dot_dimension_numbers<[1], [0], [0], [1], [0, 0, 1, 1], [], []>} : vector<104x128xbf16>, vector<128x256xbf16>, vector<104x256xf32> -> vector<104x256xf32>
    %19 = vector.extract_strided_slice %13 {offsets = [8, 0], sizes = [104, 128], strides = [1, 1]} : vector<120x128xf32> to vector<104x128xf32>
    %c1 = arith.constant 1 : index
    %c0_10 = arith.constant 0 : index
    %c0_11 = arith.constant 0 : index
    %20 = vector.load %arg4[%c1, %c0_10, %c0_11] : memref<3x128x256xbf16, #tpu.memory_space<vmem>>, vector<1x128x256xbf16>
    %21 = vector.shape_cast %20 : vector<1x128x256xbf16> to vector<128x256xbf16>
    %22 = arith.truncf %19 : vector<104x128xf32> to vector<104x128xbf16>
    %cst_12 = arith.constant dense<0.000000e+00> : vector<104x256xf32>
    %23 = tpu.matmul %22, %21, %cst_12 {dimension_numbers = #tpu.dot_dimension_numbers<[1], [0], [0], [1], [0, 0, 1, 1], [], []>} : vector<104x128xbf16>, vector<128x256xbf16>, vector<104x256xf32> -> vector<104x256xf32>
    %24 = arith.addf %18, %23 : vector<104x256xf32>
    %25 = vector.extract_strided_slice %13 {offsets = [16, 0], sizes = [104, 128], strides = [1, 1]} : vector<120x128xf32> to vector<104x128xf32>
    %c2 = arith.constant 2 : index
    %c0_13 = arith.constant 0 : index
    %c0_14 = arith.constant 0 : index
    %26 = vector.load %arg4[%c2, %c0_13, %c0_14] : memref<3x128x256xbf16, #tpu.memory_space<vmem>>, vector<1x128x256xbf16>
    %27 = vector.shape_cast %26 : vector<1x128x256xbf16> to vector<128x256xbf16>
    %28 = arith.truncf %25 : vector<104x128xf32> to vector<104x128xbf16>
    %cst_15 = arith.constant dense<0.000000e+00> : vector<104x256xf32>
    %29 = tpu.matmul %28, %27, %cst_15 {dimension_numbers = #tpu.dot_dimension_numbers<[1], [0], [0], [1], [0, 0, 1, 1], [], []>} : vector<104x128xbf16>, vector<128x256xbf16>, vector<104x256xf32> -> vector<104x256xf32>
    %30 = arith.addf %24, %29 : vector<104x256xf32>
    %c0_16 = arith.constant 0 : index
    %c0_17 = arith.constant 0 : index
    %31 = vector.load %arg5[%c0_16, %c0_17] : memref<1x256xf32, #tpu.memory_space<vmem>>, vector<1x256xf32>
    %32 = vector.broadcast %31 : vector<1x256xf32> to vector<104x256xf32>
    %33 = arith.addf %30, %32 : vector<104x256xf32>
    %cst_18 = arith.constant 0.000000e+00 : f32
    %34 = vector.broadcast %cst_18 : f32 to vector<104x256xf32>
    %35 = arith.maximumf %33, %34 : vector<104x256xf32>
    %36 = vector.extract_strided_slice %35 {offsets = [0, 0], sizes = [104, 128], strides = [1, 1]} : vector<104x256xf32> to vector<104x128xf32>
    %37 = vector.extract_strided_slice %35 {offsets = [0, 128], sizes = [104, 128], strides = [1, 1]} : vector<104x256xf32> to vector<104x128xf32>
    %38 = arith.maximumf %36, %37 : vector<104x128xf32>
    %39 = vector.extract_strided_slice %38 {offsets = [0, 0], sizes = [8, 128], strides = [1, 1]} : vector<104x128xf32> to vector<8x128xf32>
    %40 = vector.extract_strided_slice %38 {offsets = [8, 0], sizes = [8, 128], strides = [1, 1]} : vector<104x128xf32> to vector<8x128xf32>
    %41 = arith.maximumf %39, %40 : vector<8x128xf32>
    %c0_19 = arith.constant 0 : index
    %c0_20 = arith.constant 0 : index
    %c0_21 = arith.constant 0 : index
    %42 = vector.load %arg6[%c0_19, %c0_20, %c0_21] : memref<6x128x120xbf16, #tpu.memory_space<vmem>>, vector<1x128x120xbf16>
    %43 = vector.shape_cast %42 : vector<1x128x120xbf16> to vector<128x120xbf16>
    %44 = arith.truncf %41 : vector<8x128xf32> to vector<8x128xbf16>
    %cst_22 = arith.constant dense<0.000000e+00> : vector<8x120xf32>
    %45 = tpu.matmul %44, %43, %cst_22 {dimension_numbers = #tpu.dot_dimension_numbers<[1], [0], [0], [1], [0, 0, 1, 1], [], []>} : vector<8x128xbf16>, vector<128x120xbf16>, vector<8x120xf32> -> vector<8x120xf32>
    %46 = vector.extract_strided_slice %38 {offsets = [16, 0], sizes = [8, 128], strides = [1, 1]} : vector<104x128xf32> to vector<8x128xf32>
    %47 = vector.extract_strided_slice %38 {offsets = [24, 0], sizes = [8, 128], strides = [1, 1]} : vector<104x128xf32> to vector<8x128xf32>
    %48 = arith.maximumf %46, %47 : vector<8x128xf32>
    %c1_23 = arith.constant 1 : index
    %c0_24 = arith.constant 0 : index
    %c0_25 = arith.constant 0 : index
    %49 = vector.load %arg6[%c1_23, %c0_24, %c0_25] : memref<6x128x120xbf16, #tpu.memory_space<vmem>>, vector<1x128x120xbf16>
    %50 = vector.shape_cast %49 : vector<1x128x120xbf16> to vector<128x120xbf16>
    %51 = arith.truncf %48 : vector<8x128xf32> to vector<8x128xbf16>
    %cst_26 = arith.constant dense<0.000000e+00> : vector<8x120xf32>
    %52 = tpu.matmul %51, %50, %cst_26 {dimension_numbers = #tpu.dot_dimension_numbers<[1], [0], [0], [1], [0, 0, 1, 1], [], []>} : vector<8x128xbf16>, vector<128x120xbf16>, vector<8x120xf32> -> vector<8x120xf32>
    %53 = arith.addf %45, %52 : vector<8x120xf32>
    %54 = vector.extract_strided_slice %38 {offsets = [32, 0], sizes = [8, 128], strides = [1, 1]} : vector<104x128xf32> to vector<8x128xf32>
    %55 = vector.extract_strided_slice %38 {offsets = [40, 0], sizes = [8, 128], strides = [1, 1]} : vector<104x128xf32> to vector<8x128xf32>
    %56 = arith.maximumf %54, %55 : vector<8x128xf32>
    %c2_27 = arith.constant 2 : index
    %c0_28 = arith.constant 0 : index
    %c0_29 = arith.constant 0 : index
    %57 = vector.load %arg6[%c2_27, %c0_28, %c0_29] : memref<6x128x120xbf16, #tpu.memory_space<vmem>>, vector<1x128x120xbf16>
    %58 = vector.shape_cast %57 : vector<1x128x120xbf16> to vector<128x120xbf16>
    %59 = arith.truncf %56 : vector<8x128xf32> to vector<8x128xbf16>
    %cst_30 = arith.constant dense<0.000000e+00> : vector<8x120xf32>
    %60 = tpu.matmul %59, %58, %cst_30 {dimension_numbers = #tpu.dot_dimension_numbers<[1], [0], [0], [1], [0, 0, 1, 1], [], []>} : vector<8x128xbf16>, vector<128x120xbf16>, vector<8x120xf32> -> vector<8x120xf32>
    %61 = arith.addf %53, %60 : vector<8x120xf32>
    %62 = vector.extract_strided_slice %38 {offsets = [48, 0], sizes = [8, 128], strides = [1, 1]} : vector<104x128xf32> to vector<8x128xf32>
    %63 = vector.extract_strided_slice %38 {offsets = [56, 0], sizes = [8, 128], strides = [1, 1]} : vector<104x128xf32> to vector<8x128xf32>
    %64 = arith.maximumf %62, %63 : vector<8x128xf32>
    %c3 = arith.constant 3 : index
    %c0_31 = arith.constant 0 : index
    %c0_32 = arith.constant 0 : index
    %65 = vector.load %arg6[%c3, %c0_31, %c0_32] : memref<6x128x120xbf16, #tpu.memory_space<vmem>>, vector<1x128x120xbf16>
    %66 = vector.shape_cast %65 : vector<1x128x120xbf16> to vector<128x120xbf16>
    %67 = arith.truncf %64 : vector<8x128xf32> to vector<8x128xbf16>
    %cst_33 = arith.constant dense<0.000000e+00> : vector<8x120xf32>
    %68 = tpu.matmul %67, %66, %cst_33 {dimension_numbers = #tpu.dot_dimension_numbers<[1], [0], [0], [1], [0, 0, 1, 1], [], []>} : vector<8x128xbf16>, vector<128x120xbf16>, vector<8x120xf32> -> vector<8x120xf32>
    %69 = arith.addf %61, %68 : vector<8x120xf32>
    %70 = vector.extract_strided_slice %38 {offsets = [64, 0], sizes = [8, 128], strides = [1, 1]} : vector<104x128xf32> to vector<8x128xf32>
    %71 = vector.extract_strided_slice %38 {offsets = [72, 0], sizes = [8, 128], strides = [1, 1]} : vector<104x128xf32> to vector<8x128xf32>
    %72 = arith.maximumf %70, %71 : vector<8x128xf32>
    %c4 = arith.constant 4 : index
    %c0_34 = arith.constant 0 : index
    %c0_35 = arith.constant 0 : index
    %73 = vector.load %arg6[%c4, %c0_34, %c0_35] : memref<6x128x120xbf16, #tpu.memory_space<vmem>>, vector<1x128x120xbf16>
    %74 = vector.shape_cast %73 : vector<1x128x120xbf16> to vector<128x120xbf16>
    %75 = arith.truncf %72 : vector<8x128xf32> to vector<8x128xbf16>
    %cst_36 = arith.constant dense<0.000000e+00> : vector<8x120xf32>
    %76 = tpu.matmul %75, %74, %cst_36 {dimension_numbers = #tpu.dot_dimension_numbers<[1], [0], [0], [1], [0, 0, 1, 1], [], []>} : vector<8x128xbf16>, vector<128x120xbf16>, vector<8x120xf32> -> vector<8x120xf32>
    %77 = arith.addf %69, %76 : vector<8x120xf32>
    %78 = vector.extract_strided_slice %38 {offsets = [80, 0], sizes = [8, 128], strides = [1, 1]} : vector<104x128xf32> to vector<8x128xf32>
    %79 = vector.extract_strided_slice %38 {offsets = [88, 0], sizes = [8, 128], strides = [1, 1]} : vector<104x128xf32> to vector<8x128xf32>
    %80 = arith.maximumf %78, %79 : vector<8x128xf32>
    %c5 = arith.constant 5 : index
    %c0_37 = arith.constant 0 : index
    %c0_38 = arith.constant 0 : index
    %81 = vector.load %arg6[%c5, %c0_37, %c0_38] : memref<6x128x120xbf16, #tpu.memory_space<vmem>>, vector<1x128x120xbf16>
    %82 = vector.shape_cast %81 : vector<1x128x120xbf16> to vector<128x120xbf16>
    %83 = arith.truncf %80 : vector<8x128xf32> to vector<8x128xbf16>
    %cst_39 = arith.constant dense<0.000000e+00> : vector<8x120xf32>
    %84 = tpu.matmul %83, %82, %cst_39 {dimension_numbers = #tpu.dot_dimension_numbers<[1], [0], [0], [1], [0, 0, 1, 1], [], []>} : vector<8x128xbf16>, vector<128x120xbf16>, vector<8x120xf32> -> vector<8x120xf32>
    %85 = arith.addf %77, %84 : vector<8x120xf32>
    %c0_40 = arith.constant 0 : index
    %c0_41 = arith.constant 0 : index
    %86 = vector.load %arg7[%c0_40, %c0_41] : memref<1x120xf32, #tpu.memory_space<vmem>>, vector<1x120xf32>
    %87 = vector.broadcast %86 : vector<1x120xf32> to vector<8x120xf32>
    %88 = arith.addf %85, %87 : vector<8x120xf32>
    %cst_42 = arith.constant 0.000000e+00 : f32
    %89 = vector.broadcast %cst_42 : f32 to vector<8x120xf32>
    %90 = arith.maximumf %88, %89 : vector<8x120xf32>
    %c0_43 = arith.constant 0 : index
    %c0_44 = arith.constant 0 : index
    %91 = vector.load %arg8[%c0_43, %c0_44] : memref<120x84xbf16, #tpu.memory_space<vmem>>, vector<120x84xbf16>
    %92 = arith.truncf %90 : vector<8x120xf32> to vector<8x120xbf16>
    %cst_45 = arith.constant dense<0.000000e+00> : vector<8x84xf32>
    %93 = tpu.matmul %92, %91, %cst_45 {dimension_numbers = #tpu.dot_dimension_numbers<[1], [0], [0], [1], [0, 0, 1, 1], [], []>} : vector<8x120xbf16>, vector<120x84xbf16>, vector<8x84xf32> -> vector<8x84xf32>
    %c0_46 = arith.constant 0 : index
    %c0_47 = arith.constant 0 : index
    %94 = vector.load %arg9[%c0_46, %c0_47] : memref<1x84xf32, #tpu.memory_space<vmem>>, vector<1x84xf32>
    %95 = vector.broadcast %94 : vector<1x84xf32> to vector<8x84xf32>
    %96 = arith.addf %93, %95 : vector<8x84xf32>
    %cst_48 = arith.constant 0.000000e+00 : f32
    %97 = vector.broadcast %cst_48 : f32 to vector<8x84xf32>
    %98 = arith.maximumf %96, %97 : vector<8x84xf32>
    %c0_49 = arith.constant 0 : index
    %c0_50 = arith.constant 0 : index
    %99 = vector.load %arg10[%c0_49, %c0_50] : memref<84x10xbf16, #tpu.memory_space<vmem>>, vector<84x10xbf16>
    %100 = arith.truncf %98 : vector<8x84xf32> to vector<8x84xbf16>
    %cst_51 = arith.constant dense<0.000000e+00> : vector<8x10xf32>
    %101 = tpu.matmul %100, %99, %cst_51 {dimension_numbers = #tpu.dot_dimension_numbers<[1], [0], [0], [1], [0, 0, 1, 1], [], []>} : vector<8x84xbf16>, vector<84x10xbf16>, vector<8x10xf32> -> vector<8x10xf32>
    %c0_52 = arith.constant 0 : index
    %c0_53 = arith.constant 0 : index
    %102 = vector.load %arg11[%c0_52, %c0_53] : memref<1x10xf32, #tpu.memory_space<vmem>>, vector<1x10xf32>
    %103 = vector.broadcast %102 : vector<1x10xf32> to vector<8x10xf32>
    %104 = arith.addf %101, %103 : vector<8x10xf32>
    %c0_54 = arith.constant 0 : index
    %c0_55 = arith.constant 0 : index
    %105 = vector.load %arg12[%c0_54, %c0_55] : memref<8x10xf32, #tpu.memory_space<vmem>>, vector<8x10xf32>
    tpu.vector_store %arg12[%c0_54, %c0_55], %104 {strides = array<i32>} : memref<8x10xf32, #tpu.memory_space<vmem>>, vector<8x10xf32>,
    return
  }
  func.func @transform_0(%arg0: i32) -> (i32, i32) {
    %c0_i32 = arith.constant 0 : i32
    %c0_i32_0 = arith.constant 0 : i32
    return %arg0, %c0_i32 : i32, i32
  }
  func.func @transform_1(%arg0: i32) -> (i32, i32) {
    %c0_i32 = arith.constant 0 : i32
    %c0_i32_0 = arith.constant 0 : i32
    %c0_i32_1 = arith.constant 0 : i32
    return %c0_i32, %c0_i32_0 : i32, i32
  }
  func.func @transform_2(%arg0: i32) -> (i32, i32) {
    %c0_i32 = arith.constant 0 : i32
    %c0_i32_0 = arith.constant 0 : i32
    %c0_i32_1 = arith.constant 0 : i32
    return %c0_i32, %c0_i32_0 : i32, i32
  }
  func.func @transform_3(%arg0: i32) -> (i32, i32, i32) {
    %c0_i32 = arith.constant 0 : i32
    %c0_i32_0 = arith.constant 0 : i32
    %c0_i32_1 = arith.constant 0 : i32
    %c0_i32_2 = arith.constant 0 : i32
    return %c0_i32, %c0_i32_0, %c0_i32_1 : i32, i32, i32
  }
  func.func @transform_4(%arg0: i32) -> (i32, i32) {
    %c0_i32 = arith.constant 0 : i32
    %c0_i32_0 = arith.constant 0 : i32
    %c0_i32_1 = arith.constant 0 : i32
    return %c0_i32, %c0_i32_0 : i32, i32
  }
  func.func @transform_5(%arg0: i32) -> (i32, i32, i32) {
    %c0_i32 = arith.constant 0 : i32
    %c0_i32_0 = arith.constant 0 : i32
    %c0_i32_1 = arith.constant 0 : i32
    %c0_i32_2 = arith.constant 0 : i32
    return %c0_i32, %c0_i32_0, %c0_i32_1 : i32, i32, i32
  }
  func.func @transform_6(%arg0: i32) -> (i32, i32) {
    %c0_i32 = arith.constant 0 : i32
    %c0_i32_0 = arith.constant 0 : i32
    %c0_i32_1 = arith.constant 0 : i32
    return %c0_i32, %c0_i32_0 : i32, i32
  }
  func.func @transform_7(%arg0: i32) -> (i32, i32) {
    %c0_i32 = arith.constant 0 : i32
    %c0_i32_0 = arith.constant 0 : i32
    %c0_i32_1 = arith.constant 0 : i32
    return %c0_i32, %c0_i32_0 : i32, i32
  }
  func.func @transform_8(%arg0: i32) -> (i32, i32) {
    %c0_i32 = arith.constant 0 : i32
    %c0_i32_0 = arith.constant 0 : i32
    %c0_i32_1 = arith.constant 0 : i32
    return %c0_i32, %c0_i32_0 : i32, i32
  }
  func.func @transform_9(%arg0: i32) -> (i32, i32) {
    %c0_i32 = arith.constant 0 : i32
    %c0_i32_0 = arith.constant 0 : i32
    %c0_i32_1 = arith.constant 0 : i32
    return %c0_i32, %c0_i32_0 : i32, i32
  }
  func.func @transform_10(%arg0: i32) -> (i32, i32) {
    %c0_i32 = arith.constant 0 : i32
    %c0_i32_0 = arith.constant 0 : i32
    %c0_i32_1 = arith.constant 0 : i32
    return %c0_i32, %c0_i32_0 : i32, i32
  }
  func.func @transform_11(%arg0: i32) -> (i32, i32) {
    %c0_i32 = arith.constant 0 : i32
    %c0_i32_0 = arith.constant 0 : i32
    return %arg0, %c0_i32 : i32, i32
  }
}

</mosaic_0001>

<bundles_post_ra>
// kernel: tile.33
= control target key start
LH: loop header
LB: loop body
LE: loop exit
PB: predicated region body
PF: predicated region fallthrough
CT: control target
= control target key end

     0   :  { %s22_s0 = inlined_call_operand.vmem [shape: f32[16], index: 0, kind: input, shape index: {}]   ;;  %s23_s1 = inlined_call_operand.vmem [shape: f32[7,16], index: 1, kind: output, shape index: {}]  }
   0x1   :  { %v4_v0 = vld [vmem:[%s22_s0] ss:$0 sm:$0xff] }
   0x2   :  { %5 = vst [vmem:[%s23_s1] sm:$0xff] %v4_v0 }

// kernel: tile.34
= control target key start
LH: loop header
LB: loop body
LE: loop exit
PB: predicated region body
PF: predicated region fallthrough
CT: control target
= control target key end

     0   :  { %s61_s10 = smov 96   ;;  %s62_s11 = smov 64   ;;  %vm3_vm0 = vcmask 130048   ;;  %vm9_vm1 = vcmask 917248   ;;  %vm15_vm2 = vcmask 786048   ;;  %vm21_vm3 = vcmask 654848   ;;  %s101_s0 = inlined_call_operand.vmem [shape: f32[7,16], index: 0, kind: input, shape index: {}]   ;;  %s102_s1 = inlined_call_operand.vmem [shape: f32[112], index: 1, kind: output, shape index: {}]  }
   0x1   :  { %v49_v0 = vld [vmem:[%s101_s0 + $0x6] sm:$0x1]   ;;  %v51_v1 = vld [vmem:[%s101_s0 + $0x4] sm:$0x1]   ;;  %v50_v2 = vld [vmem:[%s101_s0 + $0x5] sm:$0x1]  }
   0x2   :  { %7 = vrot.lane.b32.xlu0 %v49_v0, %s61_s10  ;;  %19 = vrot.lane.b32.xlu1 %v51_v1, %s62_s11  ;;  %v52_v3 = vld [vmem:[%s101_s0 + $0x3] sm:$0x1]   ;;  %v2_v4 = vld [vmem:[%s101_s0] sm:$0x1]   ;;  %s63_s18 = smov 80   ;;  %s64_s19 = smov 48  }
   0x3   :  { %4 = vst.msk [vmem:[#allocation0] sm:$0x1] %vm3_vm0, %v2_v4   ;;  %v53_v5 = vld [vmem:[%s101_s0 + $0x2] sm:$0x1]   ;;  %v54_v6 = vld [vmem:[%s101_s0 + $0x1] sm:$0x1]  }
   0x4   :  { %s65_s0 = smov 32   ;;  %s66_s24 = smov 16   ;;  %vm27_vm4 = vcmask 523648   ;;  %vm33_vm5 = vcmask 392448   ;;  %vm39_vm6 = vcmask 261248  }
   0x6   :  { %13 = vrot.lane.b32.xlu0 %v50_v2, %s63_s18  ;;  %25 = vrot.lane.b32.xlu1 %v52_v3, %s64_s19 }
   0xa   :  { %31 = vrot.lane.b32.xlu0 %v53_v5, %s65_s0  ;;  %37 = vrot.lane.b32.xlu1 %v54_v6, %s66_s24 }
  0x74   :  { %v8_v7 = vpop.permute.xlu0 %7   ;;  %v20_v8 = vpop.permute.xlu1 %19  }
  0x75   :  { %10 = vst.msk [vmem:[#allocation0] sm:$0x1] %vm9_vm1, %v8_v7  }
  0x78   :  { %v14_v9 = vpop.permute.xlu0 %13   ;;  %v26_v10 = vpop.permute.xlu1 %25  }
  0x79   :  { %16 = vst.msk [vmem:[#allocation0] sm:$0x1] %vm15_vm2, %v14_v9  }
  0x7a   :  { %22 = vst.msk [vmem:[#allocation0] sm:$0x1] %vm21_vm3, %v20_v8  }
  0x7b   :  { %28 = vst.msk [vmem:[#allocation0] sm:$0x1] %vm27_vm4, %v26_v10  }
  0x7c   :  { %v32_v11 = vpop.permute.xlu0 %31   ;;  %v38_v12 = vpop.permute.xlu1 %37  }
  0x7d   :  { %34 = vst.msk [vmem:[#allocation0] sm:$0x1] %vm33_vm5, %v32_v11  }
  0x7e   :  { %40 = vst.msk [vmem:[#allocation0] sm:$0x1] %vm39_vm6, %v38_v12  }
  0x85   :  { %v45_v13 = vld [vmem:[#allocation0] sm:$0x1] }
  0x86   :  { %48 = vst [vmem:[%s102_s1] sm:$0x1] %v45_v13 }

// kernel: tile.39
= control target key start
LH: loop header
LB: loop body
LE: loop exit
PB: predicated region body
PF: predicated region fallthrough
CT: control target
= control target key end

     0   :  { %s53_s10 = smov 80   ;;  %s54_s11 = smov 48   ;;  %vm3_vm0 = vcmask 130048   ;;  %vm9_vm1 = vcmask 786048   ;;  %vm15_vm2 = vcmask 654848   ;;  %vm21_vm3 = vcmask 523648   ;;  %s89_s0 = inlined_call_operand.vmem [shape: f32[6,16], index: 0, kind: input, shape index: {}]   ;;  %s90_s1 = inlined_call_operand.vmem [shape: f32[96], index: 1, kind: output, shape index: {}]  }
   0x1   :  { %v43_v0 = vld [vmem:[%s89_s0 + $0x5] sm:$0x1]   ;;  %v45_v1 = vld [vmem:[%s89_s0 + $0x3] sm:$0x1]   ;;  %v44_v2 = vld [vmem:[%s89_s0 + $0x4] sm:$0x1]  }
   0x2   :  { %7 = vrot.lane.b32.xlu0 %v43_v0, %s53_s10  ;;  %19 = vrot.lane.b32.xlu1 %v45_v1, %s54_s11  ;;  %v46_v3 = vld [vmem:[%s89_s0 + $0x2] sm:$0x1]   ;;  %v2_v4 = vld [vmem:[%s89_s0] sm:$0x1]   ;;  %s55_s18 = smov 64   ;;  %s56_s19 = smov 32  }
   0x3   :  { %4 = vst.msk [vmem:[#allocation0] sm:$0x1] %vm3_vm0, %v2_v4   ;;  %v47_v5 = vld [vmem:[%s89_s0 + $0x1] sm:$0x1]   ;;  %s57_s0 = smov 16   ;;  %vm27_vm4 = vcmask 392448  }
   0x4   :  { %vm33_vm5 = vcmask 261248  }
   0x6   :  { %13 = vrot.lane.b32.xlu0 %v44_v2, %s55_s18  ;;  %25 = vrot.lane.b32.xlu1 %v46_v3, %s56_s19 }
   0xa   :  { %31 = vrot.lane.b32.xlu0 %v47_v5, %s57_s0 }
  0x74   :  { %v8_v6 = vpop.permute.xlu0 %7   ;;  %v20_v7 = vpop.permute.xlu1 %19  }
  0x75   :  { %10 = vst.msk [vmem:[#allocation0] sm:$0x1] %vm9_vm1, %v8_v6  }
  0x78   :  { %v14_v8 = vpop.permute.xlu0 %13   ;;  %v26_v9 = vpop.permute.xlu1 %25  }
  0x79   :  { %16 = vst.msk [vmem:[#allocation0] sm:$0x1] %vm15_vm2, %v14_v8  }
  0x7a   :  { %22 = vst.msk [vmem:[#allocation0] sm:$0x1] %vm21_vm3, %v20_v7  }
  0x7b   :  { %28 = vst.msk [vmem:[#allocation0] sm:$0x1] %vm27_vm4, %v26_v9  }
  0x7c   :  { %v32_v10 = vpop.permute.xlu0 %31  }
  0x7d   :  { %34 = vst.msk [vmem:[#allocation0] sm:$0x1] %vm33_vm5, %v32_v10  }
  0x84   :  { %v39_v11 = vld [vmem:[#allocation0] sm:$0x1] }
  0x85   :  { %42 = vst [vmem:[%s90_s1] sm:$0x1] %v39_v11 }

// kernel: tile.38
= control target key start
LH: loop header
LB: loop body
LE: loop exit
PB: predicated region body
PF: predicated region fallthrough
CT: control target
= control target key end

     0   :  { %s22_s0 = inlined_call_operand.vmem [shape: f32[16], index: 0, kind: input, shape index: {}]   ;;  %s23_s1 = inlined_call_operand.vmem [shape: f32[6,16], index: 1, kind: output, shape index: {}]  }
   0x1   :  { %v4_v0 = vld [vmem:[%s22_s0] ss:$0 sm:$0xff] }
   0x2   :  { %5 = vst [vmem:[%s23_s1] sm:$0xff] %v4_v0 }

// kernel: tile.23
= control target key start
LH: loop header
LB: loop body
LE: loop exit
PB: predicated region body
PF: predicated region fallthrough
CT: control target
= control target key end

     0   :  { %s28_s0 = inlined_call_operand.vmem [shape: f32[6], index: 0, kind: input, shape index: {}]   ;;  %s29_s1 = inlined_call_operand.vmem [shape: f32[15,6], index: 1, kind: output, shape index: {}]  }
   0x1   :  { %v4_v0 = vld [vmem:[%s28_s0] ss:$0 sm:$0xff] }
   0x2   :  { %5 = vst [vmem:[%s29_s1] sm:$0xff] %v4_v0  ;;  %8 = vst [vmem:[%s29_s1 + $0x8] sm:$0xff] %v4_v0 }

// kernel: tile.24
= control target key start
LH: loop header
LB: loop body
LE: loop exit
PB: predicated region body
PF: predicated region fallthrough
CT: control target
= control target key end

     0   :  { %s125_s10 = smov 84   ;;  %s126_s11 = smov 72   ;;  %vm3_vm0 = vcmask 48128   ;;  %vm9_vm1 = vcmask 736928   ;;  %vm15_vm2 = vcmask 687728   ;;  %vm21_vm3 = vcmask 638528   ;;  %s197_s0 = inlined_call_operand.vmem [shape: f32[15,6], index: 0, kind: input, shape index: {}]   ;;  %s198_s1 = inlined_call_operand.vmem [shape: f32[90], index: 1, kind: output, shape index: {}]  }
   0x1   :  { %v97_v0 = vld [vmem:[%s197_s0 + $0xe] sm:$0x1]   ;;  %v99_v1 = vld [vmem:[%s197_s0 + $0xc] sm:$0x1]   ;;  %v98_v2 = vld [vmem:[%s197_s0 + $0xd] sm:$0x1]  }
   0x2   :  { %7 = vrot.lane.b32.xlu0 %v97_v0, %s125_s10  ;;  %19 = vrot.lane.b32.xlu1 %v99_v1, %s126_s11  ;;  %v100_v3 = vld [vmem:[%s197_s0 + $0xb] sm:$0x1]   ;;  %s127_s16 = smov 78   ;;  %s128_s17 = smov 66   ;;  %v101_v4 = vld [vmem:[%s197_s0 + $0xa] sm:$0x1]  }
   0x3   :  { %v102_v5 = vld [vmem:[%s197_s0 + $0x9] sm:$0x1]   ;;  %v2_v6 = vld [vmem:[%s197_s0] sm:$0x1]   ;;  %s129_s24 = smov 60   ;;  %s130_s25 = smov 54  }
   0x4   :  { %4 = vst.msk [vmem:[#allocation0] sm:$0x1] %vm3_vm0, %v2_v6   ;;  %v103_v7 = vld [vmem:[%s197_s0 + $0x8] sm:$0x1]   ;;  %v104_v8 = vld [vmem:[%s197_s0 + $0x7] sm:$0x1]  }
   0x5   :  { %s131_s30 = smov 48   ;;  %s132_s2 = smov 42   ;;  %v105_v9 = vld [vmem:[%s197_s0 + $0x6] sm:$0x1]   ;;  %v106_v10 = vld [vmem:[%s197_s0 + $0x5] sm:$0x1]  }
   0x6   :  { %13 = vrot.lane.b32.xlu0 %v98_v2, %s127_s16  ;;  %25 = vrot.lane.b32.xlu1 %v100_v3, %s128_s17  ;;  %s133_s7 = smov 36   ;;  %s134_s8 = smov 30   ;;  %v107_v11 = vld [vmem:[%s197_s0 + $0x4] sm:$0x1]   ;;  %v108_v12 = vld [vmem:[%s197_s0 + $0x3] sm:$0x1]  }
   0x7   :  { %s135_s13 = smov 24   ;;  %s136_s14 = smov 18   ;;  %v109_v13 = vld [vmem:[%s197_s0 + $0x2] sm:$0x1]   ;;  %v110_v14 = vld [vmem:[%s197_s0 + $0x1] sm:$0x1]  }
   0x8   :  { %s137_s0 = smov 12   ;;  %s138_s19 = smov 6   ;;  %vm27_vm4 = vcmask 589328   ;;  %vm33_vm5 = vcmask 540128   ;;  %vm39_vm6 = vcmask 490928   ;;  %vm45_vm7 = vcmask 441728  }
   0x9   :  { %vm51_vm8 = vcmask 392528   ;;  %vm57_vm9 = vcmask 343328   ;;  %vm63_vm10 = vcmask 294128   ;;  %vm69_vm11 = vcmask 244928  }
   0xa   :  { %31 = vrot.lane.b32.xlu0 %v101_v4, %s129_s24  ;;  %37 = vrot.lane.b32.xlu1 %v102_v5, %s130_s25  ;;  %vm75_vm12 = vcmask 195728   ;;  %vm81_vm13 = vcmask 146528   ;;  %vm87_vm14 = vcmask 97328  }
   0xe   :  { %43 = vrot.lane.b32.xlu0 %v103_v7, %s131_s30  ;;  %49 = vrot.lane.b32.xlu1 %v104_v8, %s132_s2 }
  0x12   :  { %55 = vrot.lane.b32.xlu0 %v105_v9, %s133_s7  ;;  %61 = vrot.lane.b32.xlu1 %v106_v10, %s134_s8 }
  0x16   :  { %67 = vrot.lane.b32.xlu0 %v107_v11, %s135_s13  ;;  %73 = vrot.lane.b32.xlu1 %v108_v12, %s136_s14 }
  0x1a   :  { %79 = vrot.lane.b32.xlu0 %v109_v13, %s137_s0  ;;  %85 = vrot.lane.b32.xlu1 %v110_v14, %s138_s19 }
  0x74   :  { %v8_v15 = vpop.permute.xlu0 %7   ;;  %v20_v16 = vpop.permute.xlu1 %19  }
  0x75   :  { %10 = vst.msk [vmem:[#allocation0] sm:$0x1] %vm9_vm1, %v8_v15  }
  0x78   :  { %v14_v17 = vpop.permute.xlu0 %13   ;;  %v26_v18 = vpop.permute.xlu1 %25  }
  0x79   :  { %16 = vst.msk [vmem:[#allocation0] sm:$0x1] %vm15_vm2, %v14_v17  }
  0x7a   :  { %22 = vst.msk [vmem:[#allocation0] sm:$0x1] %vm21_vm3, %v20_v16  }
  0x7b   :  { %28 = vst.msk [vmem:[#allocation0] sm:$0x1] %vm27_vm4, %v26_v18  }
  0x7c   :  { %v32_v19 = vpop.permute.xlu0 %31   ;;  %v38_v20 = vpop.permute.xlu1 %37  }
  0x7d   :  { %34 = vst.msk [vmem:[#allocation0] sm:$0x1] %vm33_vm5, %v32_v19  }
  0x7e   :  { %40 = vst.msk [vmem:[#allocation0] sm:$0x1] %vm39_vm6, %v38_v20  }
  0x80   :  { %v44_v21 = vpop.permute.xlu0 %43   ;;  %v50_v22 = vpop.permute.xlu1 %49  }
  0x81   :  { %46 = vst.msk [vmem:[#allocation0] sm:$0x1] %vm45_vm7, %v44_v21  }
  0x82   :  { %52 = vst.msk [vmem:[#allocation0] sm:$0x1] %vm51_vm8, %v50_v22  }
  0x84   :  { %v56_v23 = vpop.permute.xlu0 %55   ;;  %v62_v24 = vpop.permute.xlu1 %61  }
  0x85   :  { %58 = vst.msk [vmem:[#allocation0] sm:$0x1] %vm57_vm9, %v56_v23  }
  0x86   :  { %64 = vst.msk [vmem:[#allocation0] sm:$0x1] %vm63_vm10, %v62_v24  }
  0x88   :  { %v68_v25 = vpop.permute.xlu0 %67   ;;  %v74_v26 = vpop.permute.xlu1 %73  }
  0x89   :  { %70 = vst.msk [vmem:[#allocation0] sm:$0x1] %vm69_vm11, %v68_v25  }
  0x8a   :  { %76 = vst.msk [vmem:[#allocation0] sm:$0x1] %vm75_vm12, %v74_v26  }
  0x8c   :  { %v80_v27 = vpop.permute.xlu0 %79   ;;  %v86_v28 = vpop.permute.xlu1 %85  }
  0x8d   :  { %82 = vst.msk [vmem:[#allocation0] sm:$0x1] %vm81_vm13, %v80_v27  }
  0x8e   :  { %88 = vst.msk [vmem:[#allocation0] sm:$0x1] %vm87_vm14, %v86_v28  }
  0x95   :  { %v93_v29 = vld [vmem:[#allocation0] sm:$0x1] }
  0x96   :  { %96 = vst [vmem:[%s198_s1] sm:$0x1] %v93_v29 }

// kernel: image_model_forward.1
= control target key start
LH: loop header
LB: loop body
LE: loop exit
PB: predicated region body
PF: predicated region fallthrough
CT: control target
= control target key end

     0   :  { %16 = vsyncpa [#allocation3], 0  ;;  %s5199_s0 = inlined_call_operand.vmem [shape: bf16[480,288], index: 0, kind: input, shape index: {}]   ;;  %s5200_s1 = inlined_call_operand.vmem [shape: bf16[288,256], index: 1, kind: input, shape index: {}]   ;;  %s5201_s2 = inlined_call_operand.vmem [shape: f32[1,256], index: 2, kind: input, shape index: {}]   ;;  %s5202_s3 = inlined_call_operand.vmem [shape: bf16[3,128,256], index: 3, kind: input, shape index: {}]   ;;  %s5203_s4 = inlined_call_operand.vmem [shape: f32[1,256], index: 4, kind: input, shape index: {}]   ;;  %s5204_s5 = inlined_call_operand.vmem [shape: bf16[6,128,120], index: 5, kind: input, shape index: {}]   ;;  %s5205_s6 = inlined_call_operand.vmem [shape: f32[1,120], index: 6, kind: input, shape index: {}]   ;;  %s5206_s7 = inlined_call_operand.vmem [shape: bf16[120,84], index: 7, kind: input, shape index: {}]   ;;  %s5207_s8 = inlined_call_operand.vmem [shape: f32[1,84], index: 8, kind: input, shape index: {}]   ;;  %s5208_s9 = inlined_call_operand.vmem [shape: bf16[84,10], index: 9, kind: input, shape index: {}]   ;;  %s5209_s10 = inlined_call_operand.vmem [shape: f32[1,10], index: 10, kind: input, shape index: {}]   ;;  %s5210_s11 = inlined_call_operand.hbm [shape: f32[16,10], index: 11, kind: output, shape index: {}]  }
   0x1   :  { %18 = vsyncpa [#allocation3 + $0x1], 0  ;;  %s4042_s17 = smov 0   ;;  %s4044_s18 = smov 0  }
   0x2   :  { %s4046_s19 = smov 0   ;;  %s4048_s20 = smov 0  }
   0x3 LB: > { %5218 = sst [smem:[#allocation5_spill]] %s3972_s19  ;;  %s4063_s21 = sadd.s32 4294967295, %s3976_s20   ;;  %s3976_s20 = sphi %s4048_s20, %s5269_s20   ;;  %s3972_s19 = sphi %s4046_s19, %s5266_s19   ;;  %s3968_s18 = sphi %s4044_s18, %s5268_s18   ;;  %s3964_s17 = sphi %s4042_s17, %s5267_s17  }
   0x4   : > { %s3066_s22 = sadd.s32 4294967294, %s3976_s20   ;;  %s4067_s23 = sadd.s32 1, %s3976_s20  }
   0x5   : > { %s267_s24 = sadd.s32 1, %s3972_s19  ;;  %s264_s25 = ssub.s32 %s3976_s20, %s4067_s23 }
   0x6   : > { %p277_p0 = scmp.ne.s32.totalorder %s3972_s19, %s3968_s18  ;;  %p265_p1 = scmp.eq.s32.totalorder %s264_s25, 0 }
   0x7   : > { %p278_p2 = scmp.eq.s32.totalorder %s4063_s21, 1  ;;  %p283_p3 = scmp.ne.s32.totalorder %s3968_s18, %s3964_s17 }
   0x8   : > { %p284_p4 = scmp.eq.s32.totalorder %s3066_s22, 1  ;;  %p3069_p7 = scmp.ge.s32.totalorder %s3976_s20, 1 }
   0x9   : > { %s4078_s26 = scalar_select %p265_p1, %s3972_s19, %s267_s24  }
   0xa   : > { %p4080_p5 = por %p278_p2, %p277_p0  ;;  %p4084_p6 = por %p284_p4, %p283_p3 }
   0xb   : > { %5219 = sst [smem:[#allocation6_spill]] %s4078_s26  ;;  %p342_p8 = scmp.lt.s32.totalorder %s3976_s20, 3 }
   0xd   : > { %p343_p9 = pnand %p3069_p7, %p342_p8 }
   0xf   : > { %346 = sbr.rel (%p343_p9) target bundleno = 1311 (0x51f), region = 64 }
  0x14   : > { %v3668_v0 = vld [vmem:[%s5200_s1 + $0x74] ss:$8 sps:$4 sm:$0xff]   ;;  %v3670_v1 = vld [vmem:[%s5200_s1 + $0x70] ss:$8 sps:$4 sm:$0xff]   ;;  %v5214_v2 = vmov 0   ;;  %s383_s29 = smul.u32 30, %s4063_s21 }
  0x15   : > { %1165 = vmatprep.mubr.bf16.mxu1 %v5214_v2  ;;  %950 = vmatprep.subr.bf16.mxu0 %v3668_v0  ;;  %v3671_v3 = vld [vmem:[%s5200_s1 + $0x64] ss:$8 sps:$4 sm:$0xff]   ;;  %v3673_v4 = vld [vmem:[%s5200_s1 + $0x60] ss:$8 sps:$4 sm:$0xff]   ;;  %v3674_v5 = vld [vmem:[%s5200_s1 + $0x54] ss:$8 sps:$4 sm:$0xff]  }
  0x16   : > { %951 = vmatpush1.bf16.msra.mxu0 %v3670_v1  ;;  %v3676_v6 = vld [vmem:[%s5200_s1 + $0x50] ss:$8 sps:$4 sm:$0xff]   ;;  %v3677_v7 = vld [vmem:[%s5200_s1 + $0x44] ss:$8 sps:$4 sm:$0xff]   ;;  %p384_p10 = scmp.lt.s32.totalorder %s383_s29, 59  ;;  %vm904_vm0 = vcmask 261120  }
  0x17   : > { %952 = vmatprep.subr.bf16.mxu0 %v3671_v3  ;;  %v3679_v8 = vld [vmem:[%s5200_s1 + $0x40] ss:$8 sps:$4 sm:$0xff]   ;;  %v3680_v9 = vld [vmem:[%s5200_s1 + $0x34] ss:$8 sps:$4 sm:$0xff]   ;;  %v3682_v10 = vld [vmem:[%s5200_s1 + $0x30] ss:$8 sps:$4 sm:$0xff]  }
  0x18   : > { %s5271_s29 = smov (!%p384_p10, %s383_s29), 59  ;;  %v3683_v11 = vld [vmem:[%s5200_s1 + $0x24] ss:$8 sps:$4 sm:$0xff]   ;;  %v3685_v12 = vld [vmem:[%s5200_s1 + $0x20] ss:$8 sps:$4 sm:$0xff]   ;;  %vm3980_vm1 = vmmov 0  }
  0x19   : > { %s3625_s14 = smul.u32 12, %s5271_s29  ;;  %v3709_v13 = vld [vmem:[%s5200_s1 + $0x114] ss:$8 sps:$4 sm:$0xff]   ;;  %v3712_v14 = vld [vmem:[%s5200_s1 + $0x110] ss:$8 sps:$4 sm:$0xff]   ;;  %vm2846_vm2 = vcmask 1043456  }
  0x1a   : > { %953 = vmatpush1.bf16.msra.mxu0 %v3673_v4  ;;  %v3686_v15 = vld [vmem:[%s5200_s1 + $0x14] ss:$8 sps:$4 sm:$0xff]   ;;  %1145 = vmatprep.subr.bf16.mxu1 %v3709_v13  ;;  %v3715_v16 = vld [vmem:[%s5200_s1 + $0x104] ss:$8 sps:$4 sm:$0xff]   ;;  %v3718_v17 = vld [vmem:[%s5200_s1 + $0x100] ss:$8 sps:$4 sm:$0xff]  }
  0x1b   : > { %954 = vmatprep.subr.bf16.mxu0 %v3674_v5  ;;  %1146 = vmatpush1.bf16.msra.mxu1 %v3712_v14  ;;  %s4146_s19 = scalar_lea.vmem %s5199_s0, %s3625_s14  ;;  %v3688_v18 = vld [vmem:[%s5200_s1 + $0x10] ss:$8 sps:$4 sm:$0xff]   ;;  %v3689_v19 = vld [vmem:[%s5200_s1 + $0x4] ss:$8 sps:$4 sm:$0xff]   ;;  %v3691_v22 = vld [vmem:[%s5200_s1] ss:$8 sps:$4 sm:$0xff]  }
  0x1c   : > { %1147 = vmatprep.subr.bf16.mxu1 %v3715_v16  ;;  %v3721_v20 = vld [vmem:[%s4146_s19 + $0x8] ss:$12 sps:$4 sm:$0xff]   ;;  %v3725_v21 = vld [vmem:[%s4146_s19 + $0x4] ss:$12 sps:$4 sm:$0xff]   ;;  %v3726_v26 = vld [vmem:[%s4146_s19 + $0x20] ss:$12 sps:$4 sm:$0xff]  }
  0x1d   : > { %v3692_v23 = vld [vmem:[%s5200_s1 + $0xf4] ss:$8 sps:$4 sm:$0xff]   ;;  %982 = vmatprep.mubr.bf16.mxu0 %v3725_v21  ;;  %v3694_v24 = vld [vmem:[%s5200_s1 + $0xf0] ss:$8 sps:$4 sm:$0xff]   ;;  %v3695_v25 = vld [vmem:[%s5200_s1 + $0xe4] ss:$8 sps:$4 sm:$0xff]  }
  0x1e   : > { %955 = vmatpush1.bf16.msra.mxu0 %v3676_v6  ;;  %v3697_v27 = vld [vmem:[%s5200_s1 + $0xe0] ss:$8 sps:$4 sm:$0xff]   ;;  %v3698_v28 = vld [vmem:[%s5200_s1 + $0xd4] ss:$8 sps:$4 sm:$0xff]   ;;  %v3700_v29 = vld [vmem:[%s5200_s1 + $0xd0] ss:$8 sps:$4 sm:$0xff]  }
  0x1f   : > { %956 = vmatprep.subr.bf16.mxu0 %v3677_v7  ;;  %1148 = vmatpush1.bf16.msra.mxu1 %v3718_v17  ;;  %v3701_v30 = vld [vmem:[%s5200_s1 + $0xc4] ss:$8 sps:$4 sm:$0xff]   ;;  %v3703_v32 = vld [vmem:[%s5200_s1 + $0xc0] ss:$8 sps:$4 sm:$0xff]   ;;  %v3704_v33 = vld [vmem:[%s5200_s1 + $0xb4] ss:$8 sps:$4 sm:$0xff]  }
  0x20   : > { %v3730_v31 = vld [vmem:[%s4146_s19 + $0x38] ss:$12 sps:$4 sm:$0xff]   ;;  %v3734_v36 = vld [vmem:[%s4146_s19 + $0x50] ss:$12 sps:$4 sm:$0xff]   ;;  %v3711_v37 = vld [vmem:[%s5200_s1 + $0xa0] ss:$8 sps:$4 sm:$0xff]  }
  0x21   : > { %v3706_v34 = vld [vmem:[%s5200_s1 + $0xb0] ss:$8 sps:$4 sm:$0xff]   ;;  %v3707_v35 = vld [vmem:[%s5200_s1 + $0xa4] ss:$8 sps:$4 sm:$0xff]   ;;  %v3713_v38 = vld [vmem:[%s5200_s1 + $0x94] ss:$8 sps:$4 sm:$0xff]  }
  0x22   : > { %957 = vmatpush1.bf16.msra.mxu0 %v3679_v8  ;;  %3153 = vmatmul.mubr.msk.bf16.vlgmr.msra.gmra.mxu1 %vm904_vm0, %v3721_v20  ;;  %v3717_v39 = vld [vmem:[%s5200_s1 + $0x90] ss:$8 sps:$4 sm:$0xff]   ;;  %v3719_v40 = vld [vmem:[%s5200_s1 + $0x84] ss:$8 sps:$4 sm:$0xff]   ;;  %v3738_v41 = vld [vmem:[%s4146_s19 + $0x68] ss:$12 sps:$4 sm:$0xff]  }
  0x23   : > { %958 = vmatprep.subr.bf16.mxu0 %v3680_v9  ;;  %1175 = vmatprep.mubr.bf16.mxu1 %v5214_v2  ;;  %v3722_v42 = vld [vmem:[%s5200_s1 + $0x80] ss:$8 sps:$4 sm:$0xff]   ;;  %v3782_v43 = vld [vmem:[%s5202_s3 + $0xf0] ss:$8 sps:$4 sm:$0xff]   ;;  %v3784_v45 = vld [vmem:[%s5202_s3 + $0xf4] ss:$8 sps:$4 sm:$0xff]  }
  0x24   : > { %v3723_v44 = vld [vmem:[%s4146_s19] ss:$12 sps:$4 sm:$0xff]   ;;  %v3727_v46 = vld [vmem:[%s4146_s19 + $0x1c] ss:$12 sps:$4 sm:$0xff]   ;;  %1548 = vmatprep.subr.bf16.mxu1 %v3784_v45  ;;  %v3788_v51 = vld [vmem:[%s5202_s3 + $0xd0] ss:$8 sps:$4 sm:$0xff]  }
  0x25   : > { %v3787_v47 = vld [vmem:[%s5202_s3 + $0xe4] ss:$8 sps:$4 sm:$0xff]   ;;  %v3785_v48 = vld [vmem:[%s5202_s3 + $0xe0] ss:$8 sps:$4 sm:$0xff]   ;;  %v3790_v49 = vld [vmem:[%s5202_s3 + $0xd4] ss:$8 sps:$4 sm:$0xff]   ;;  %1549 = vmatpush1.bf16.msra.mxu1 %v3782_v43 }
  0x26   : > { %959 = vmatpush1.bf16.msra.mxu0 %v3682_v10  ;;  %v3742_v50 = vld [vmem:[%s4146_s19 + $0x80] ss:$12 sps:$4 sm:$0xff]   ;;  %1550 = vmatprep.subr.bf16.mxu1 %v3787_v47  ;;  %v3729_v52 = vld [vmem:[%s4146_s19 + $0x18] ss:$12 sps:$4 sm:$0xff]   ;;  %v3733_v55 = vld [vmem:[%s4146_s19 + $0x30] ss:$12 sps:$4 sm:$0xff]  }
  0x27   : > { %960 = vmatprep.subr.bf16.mxu0 %v3683_v11  ;;  %v3731_v53 = vld [vmem:[%s4146_s19 + $0x34] ss:$12 sps:$4 sm:$0xff]   ;;  %v3746_v54 = vld [vmem:[%s4146_s19 + $0x98] ss:$12 sps:$4 sm:$0xff]   ;;  %v3750_v57 = vld [vmem:[%s4146_s19 + $0xb0] ss:$12 sps:$4 sm:$0xff]  }
  0x28   : > { %v3735_v56 = vld [vmem:[%s4146_s19 + $0x4c] ss:$12 sps:$4 sm:$0xff]   ;;  %v3737_v58 = vld [vmem:[%s4146_s19 + $0x48] ss:$12 sps:$4 sm:$0xff]   ;;  %v3739_v59 = vld [vmem:[%s4146_s19 + $0x64] ss:$12 sps:$4 sm:$0xff]  }
  0x29   : > { %1551 = vmatpush1.bf16.msra.mxu1 %v3785_v48  ;;  %v3754_v60 = vld [vmem:[%s4146_s19 + $0xc8] ss:$12 sps:$4 sm:$0xff]   ;;  %v3741_v61 = vld [vmem:[%s4146_s19 + $0x60] ss:$12 sps:$4 sm:$0xff]   ;;  %v3745_v0 = vld [vmem:[%s4146_s19 + $0x78] ss:$12 sps:$4 sm:$0xff]  }
  0x2a   : > { %961 = vmatpush1.bf16.msra.mxu0 %v3685_v12  ;;  %3154 = vmatmul.mubr.msk.bf16.gmra.mxu1 %vm904_vm0, %v3726_v26  ;;  %v3743_v62 = vld [vmem:[%s4146_s19 + $0x7c] ss:$12 sps:$4 sm:$0xff]   ;;  %v3758_v63 = vld [vmem:[%s4146_s19 + $0xe0] ss:$12 sps:$4 sm:$0xff]   ;;  %v3762_v3 = vld [vmem:[%s4146_s19 + $0xf8] ss:$12 sps:$4 sm:$0xff]  }
  0x2b   : > { %962 = vmatprep.subr.bf16.mxu0 %v3686_v15  ;;  %1185 = vmatprep.mubr.bf16.mxu1 %v5214_v2  ;;  %v3747_v1 = vld [vmem:[%s4146_s19 + $0x94] ss:$12 sps:$4 sm:$0xff]   ;;  %v3749_v4 = vld [vmem:[%s4146_s19 + $0x90] ss:$12 sps:$4 sm:$0xff]   ;;  %v3751_v5 = vld [vmem:[%s4146_s19 + $0xac] ss:$12 sps:$4 sm:$0xff]  }
  0x2c   : > { %1552 = vmatprep.subr.bf16.mxu1 %v3790_v49  ;;  %v3766_v6 = vld [vmem:[%s4146_s19 + $0x110] ss:$12 sps:$4 sm:$0xff]   ;;  %v3753_v7 = vld [vmem:[%s4146_s19 + $0xa8] ss:$12 sps:$4 sm:$0xff]   ;;  %v3757_v10 = vld [vmem:[%s4146_s19 + $0xc0] ss:$12 sps:$4 sm:$0xff]  }
  0x2d   : > { %1553 = vmatpush1.bf16.msra.mxu1 %v3788_v51  ;;  %v3755_v8 = vld [vmem:[%s4146_s19 + $0xc4] ss:$12 sps:$4 sm:$0xff]   ;;  %v3770_v9 = vld [vmem:[%s4146_s19 + $0x128] ss:$12 sps:$4 sm:$0xff]   ;;  %v3774_v12 = vld [vmem:[%s4146_s19 + $0x140] ss:$12 sps:$4 sm:$0xff]  }
  0x2e   : > { %963 = vmatpush1.bf16.msra.mxu0 %v3688_v18  ;;  %v3759_v11 = vld [vmem:[%s4146_s19 + $0xdc] ss:$12 sps:$4 sm:$0xff]   ;;  %v3761_v13 = vld [vmem:[%s4146_s19 + $0xd8] ss:$12 sps:$4 sm:$0xff]   ;;  %v3763_v14 = vld [vmem:[%s4146_s19 + $0xf4] ss:$12 sps:$4 sm:$0xff]  }
  0x2f   : > { %964 = vmatprep.subr.bf16.mxu0 %v3689_v19  ;;  %v3781_v15 = vld [vmem:[%s4146_s19 + $0x158] ss:$12 sps:$4 sm:$0xff]   ;;  %v3765_v16 = vld [vmem:[%s4146_s19 + $0xf0] ss:$12 sps:$4 sm:$0xff]   ;;  %v3791_v18 = vld [vmem:[%s5202_s3 + $0xc0] ss:$8 sps:$4 sm:$0xff]  }
  0x30   : > { %v3767_v17 = vld [vmem:[%s4146_s19 + $0x10c] ss:$12 sps:$4 sm:$0xff]   ;;  %v3769_v20 = vld [vmem:[%s4146_s19 + $0x108] ss:$12 sps:$4 sm:$0xff]   ;;  %v3771_v21 = vld [vmem:[%s4146_s19 + $0x124] ss:$12 sps:$4 sm:$0xff]  }
  0x31   : > { %v3793_v19 = vld [vmem:[%s5202_s3 + $0xc4] ss:$8 sps:$4 sm:$0xff]   ;;  %v3797_v26 = vld [vmem:[%s5202_s3 + $0xb0] ss:$8 sps:$4 sm:$0xff]   ;;  %v3826_v45 = vld [vmem:[%s5202_s3 + $0x14] ss:$8 sps:$4 sm:$0xff]  }
  0x32   : > { %965 = vmatpush1.bf16.msra.mxu0 %v3691_v22  ;;  %3155 = vmatmul.mubr.msk.bf16.gmra.mxu1 %vm904_vm0, %v3730_v31  ;;  %v3794_v22 = vld [vmem:[%s5202_s3 + $0x70] ss:$8 sps:$4 sm:$0xff]   ;;  %v3802_v31 = vld [vmem:[%s5202_s3 + $0x64] ss:$8 sps:$4 sm:$0xff]   ;;  %v3827_v48 = vld [vmem:[%s5202_s3] ss:$8 sps:$4 sm:$0xff]  }
  0x33   : > { %966 = vmatprep.subr.bf16.mxu0 %v3692_v23  ;;  %1195 = vmatprep.mubr.bf16.mxu1 %v5214_v2  ;;  %v3796_v23 = vld [vmem:[%s5202_s3 + $0x74] ss:$8 sps:$4 sm:$0xff]   ;;  %v3823_v43 = vld [vmem:[%s5202_s3 + $0x24] ss:$8 sps:$4 sm:$0xff]   ;;  %v3818_v49 = vld [vmem:[%s5202_s3 + $0x80] ss:$8 sps:$4 sm:$0xff]  }
  0x34   : > { %1554 = vmatprep.subr.bf16.mxu1 %v3793_v19  ;;  %v3829_v47 = vld [vmem:[%s5202_s3 + $0x4] ss:$8 sps:$4 sm:$0xff]   ;;  %v3832_v51 = vld [vmem:[%s5202_s3 + $0x174] ss:$8 sps:$4 sm:$0xff]   ;;  %vm2947_vm3 = vcmask 1041408   ;;  %vm2842_vm4 = vcmask 982016  }
  0x35   : > { %1555 = vmatpush1.bf16.msra.mxu1 %v3791_v18  ;;  %vm2943_vm5 = vcmask 687104   ;;  %s380_s15 = sand.u32 1, %s3968_s18   ;;  %s3396_s22 = sshll.u32 %s4063_s21, 7  ;;  %vm2991_vm6 = vcmask 80896  }
  0x36   : > { %967 = vmatpush2.bf16.msra.mxu0 %v3694_v24  ;;  %v3773_v24 = vld [vmem:[%s4146_s19 + $0x120] ss:$12 sps:$4 sm:$0xff]   ;;  %s3070_s26 = sshll.u32 %s380_s15, 3  ;;  %s5158_s29 = scalar_lea.hbm %s5210_s11, %s3396_s22 }
  0x37   : > { %968 = vmatprep.subr.bf16.mxu0 %v3695_v25  ;;  %v3775_v25 = vld [vmem:[%s4146_s19 + $0x13c] ss:$12 sps:$4 sm:$0xff]   ;;  %s382_s24 = scalar_lea.vmem [#allocation2], %s3070_s26  ;;  %s2994_s12 = scalar_lea.sflag [#allocation3], %s380_s15 }
  0x38   : > { %s3007_s25 = sshll.u32 %s382_s24, 4  ;;  %s3981_s13 = smov [#allocation2]   ;;  %s5160_s25 = int_to_ptr.vmem [resolvable:$true] %s3007_s25 }
  0x39   : > { %s3916_s21 = scalar_lea.vmem %s5160_s25, 128  ;;  %s3920_s26 = sshll.u32 %s3981_s13, 4  ;;  %s3921_s26 = int_to_ptr.vmem [resolvable:$false] %s3920_s26 }
  0x3a   : > { %969 = vmatpush2.bf16.msra.mxu0 %v3697_v27  ;;  %3156 = vmatmul.mubr.msk.bf16.gmra.mxu1 %vm904_vm0, %v3734_v36  ;;  %v3799_v27 = vld [vmem:[%s5202_s3 + $0xb4] ss:$8 sps:$4 sm:$0xff]   ;;  %p3917_p11 = scmp.ne.s32.totalorder %s5160_s25, %s3916_s21  ;;  %s3922_s16 = scalar_lea.vmem %s3921_s26, 256 }
  0x3b   : > { %970 = vmatprep.subr.bf16.mxu0 %v3698_v28  ;;  %1205 = vmatprep.mubr.bf16.mxu1 %v5214_v2  ;;  %v3777_v28 = vld [vmem:[%s4146_s19 + $0x138] ss:$12 sps:$4 sm:$0xff]   ;;  %v3808_v36 = vld [vmem:[%s5202_s3 + $0x54] ss:$8 sps:$4 sm:$0xff]   ;;  %p3923_p0 = scmp.lt.s32.totalorder %s5160_s25, %s3921_s26  ;;  %p3924_p1 = scmp.lt.s32.totalorder %s3922_s16, %s3916_s21 }
  0x3c   : > { %1556 = vmatprep.subr.bf16.mxu1 %v3799_v27  ;;  %p3918_p12 = pnand %p3917_p11, %p4080_p5 }
  0x3d   : > { %1557 = vmatpush1.bf16.msra.mxu1 %v3797_v26  ;;  %p3925_p2 = por %p3924_p1, %p3923_p0 }
  0x3e   : > { %971 = vmatpush2.bf16.msra.mxu0 %v3700_v29  ;;  %v3778_v29 = vld [vmem:[%s4146_s19 + $0x154] ss:$12 sps:$4 sm:$0xff]   ;;  %p3919_p13 = pneg %p3918_p12 }
  0x3f   : > { %972 = vmatprep.subr.bf16.mxu0 %v3701_v30  ;;  %v3800_v30 = vld [vmem:[%s5202_s3 + $0x60] ss:$8 sps:$4 sm:$0xff]  }
  0x40   : > { %p3926_p3 = pnand %p3925_p2, %p3919_p13 }
  0x42   : > { %973 = vmatpush2.bf16.msra.mxu0 %v3703_v32  ;;  %3157 = vmatmul.mubr.msk.bf16.gmra.mxu1 %vm904_vm0, %v3738_v41  ;;  %v3803_v32 = vld [vmem:[%s5202_s3 + $0xa0] ss:$8 sps:$4 sm:$0xff]   ;;  %v3817_v41 = vld [vmem:[%s5202_s3 + $0x34] ss:$8 sps:$4 sm:$0xff]  }
  0x43   : > { %974 = vmatprep.subr.bf16.mxu0 %v3704_v33  ;;  %1215 = vmatprep.mubr.bf16.mxu1 %v5214_v2  ;;  %v3805_v33 = vld [vmem:[%s5202_s3 + $0xa4] ss:$8 sps:$4 sm:$0xff]  }
  0x44   : > { %1558 = vmatprep.subr.bf16.mxu1 %v3805_v33 }
  0x45   : > { %1559 = vmatpush1.bf16.msra.mxu1 %v3803_v32 }
  0x46   : > { %975 = vmatpush2.bf16.msra.mxu0 %v3706_v34  ;;  %v3780_v34 = vld [vmem:[%s4146_s19 + $0x150] ss:$12 sps:$4 sm:$0xff]  }
  0x47   : > { %976 = vmatprep.subr.bf16.mxu0 %v3707_v35  ;;  %v3806_v35 = vld [vmem:[%s5202_s3 + $0x50] ss:$8 sps:$4 sm:$0xff]  }
  0x4a   : > { %977 = vmatpush2.bf16.msra.mxu0 %v3711_v37  ;;  %3158 = vmatmul.mubr.msk.bf16.gmra.mxu1 %vm904_vm0, %v3742_v50  ;;  %v3809_v37 = vld [vmem:[%s5202_s3 + $0x90] ss:$8 sps:$4 sm:$0xff]   ;;  %v3820_v50 = vld [vmem:[%s5202_s3 + $0x84] ss:$8 sps:$4 sm:$0xff]  }
  0x4b   : > { %978 = vmatprep.subr.bf16.mxu0 %v3713_v38  ;;  %1225 = vmatprep.mubr.bf16.mxu1 %v5214_v2  ;;  %v3811_v38 = vld [vmem:[%s5202_s3 + $0x94] ss:$8 sps:$4 sm:$0xff]  }
  0x4c   : > { %1560 = vmatprep.subr.bf16.mxu1 %v3811_v38 }
  0x4d   : > { %1561 = vmatpush1.bf16.msra.mxu1 %v3809_v37 }
  0x4e   : > { %979 = vmatpush2.bf16.msra.mxu0 %v3717_v39  ;;  %v3814_v39 = vld [vmem:[%s5202_s3 + $0x44] ss:$8 sps:$4 sm:$0xff]   ;;  %1562 = vmatprep.subr.bf16.mxu1 %v3820_v50 }
  0x4f   : > { %980 = vmatprep.subr.bf16.mxu0 %v3719_v40  ;;  %v3812_v40 = vld [vmem:[%s5202_s3 + $0x40] ss:$8 sps:$4 sm:$0xff]  }
  0x51   : > { %1563 = vmatpush1.bf16.msra.mxu1 %v3818_v49 }
  0x52   : > { %981 = vmatpush2.bf16.msra.mxu0 %v3722_v42  ;;  %3159 = vmatmul.mubr.msk.bf16.gmra.mxu1 %vm904_vm0, %v3746_v54  ;;  %v3815_v42 = vld [vmem:[%s5202_s3 + $0x30] ss:$8 sps:$4 sm:$0xff]  }
  0x53   : > { %1235 = vmatprep.mubr.bf16.mxu1 %v5214_v2  ;;  %1727 = vmatprep.subr.bf16.mxu0 %v3796_v23 }
  0x54   : > { %1925 = vmatprep.subr.bf16.mxu1 %v3832_v51 }
  0x55   : > { %983 = vmatmul.mubr.bf16.vlgmr.msra.gmra.mxu0 %v3723_v44  ;;  %v3821_v44 = vld [vmem:[%s5202_s3 + $0x20] ss:$8 sps:$4 sm:$0xff]  }
  0x56   : > { %992 = vmatprep.mubr.bf16.mxu0 %v3727_v46  ;;  %1728 = vmatpush1.bf16.msra.mxu0 %v3794_v22  ;;  %v3824_v46 = vld [vmem:[%s5202_s3 + $0x10] ss:$8 sps:$4 sm:$0xff]  }
  0x57   : > { %1729 = vmatprep.subr.bf16.mxu0 %v3802_v31 }
  0x5a   : > { %3160 = vmatmul.mubr.msk.bf16.gmra.mxu1 %vm904_vm0, %v3750_v57  ;;  %1730 = vmatpush1.bf16.msra.mxu0 %v3800_v30 }
  0x5b   : > { %1245 = vmatprep.mubr.bf16.mxu1 %v5214_v2  ;;  %1731 = vmatprep.subr.bf16.mxu0 %v3808_v36 }
  0x5d   : > { %993 = vmatmul.mubr.bf16.gmra.mxu0 %v3729_v52 }
  0x5e   : > { %1002 = vmatprep.mubr.bf16.mxu0 %v3731_v53  ;;  %1732 = vmatpush1.bf16.msra.mxu0 %v3806_v35 }
  0x5f   : > { %1733 = vmatprep.subr.bf16.mxu0 %v3814_v39 }
  0x62   : > { %3161 = vmatmul.mubr.msk.bf16.gmra.mxu1 %vm904_vm0, %v3754_v60  ;;  %1734 = vmatpush1.bf16.msra.mxu0 %v3812_v40 }
  0x63   : > { %1255 = vmatprep.mubr.bf16.mxu1 %v5214_v2  ;;  %1735 = vmatprep.subr.bf16.mxu0 %v3817_v41 }
  0x65   : > { %1003 = vmatmul.mubr.bf16.gmra.mxu0 %v3733_v55 }
  0x66   : > { %1012 = vmatprep.mubr.bf16.mxu0 %v3735_v56  ;;  %1736 = vmatpush1.bf16.msra.mxu0 %v3815_v42 }
  0x67   : > { %1737 = vmatprep.subr.bf16.mxu0 %v3823_v43 }
  0x6a   : > { %3162 = vmatmul.mubr.msk.bf16.gmra.mxu1 %vm904_vm0, %v3758_v63  ;;  %1738 = vmatpush1.bf16.msra.mxu0 %v3821_v44  ;;  %v489_v63 = vlaneseq }
  0x6b   : > { %1265 = vmatprep.mubr.bf16.mxu1 %v5214_v2  ;;  %1739 = vmatprep.subr.bf16.mxu0 %v3826_v45 }
  0x6d   : > { %1013 = vmatmul.mubr.bf16.gmra.mxu0 %v3737_v58 }
  0x6e   : > { %1022 = vmatprep.mubr.bf16.mxu0 %v3739_v59  ;;  %1740 = vmatpush1.bf16.msra.mxu0 %v3824_v46 }
  0x6f   : > { %1741 = vmatprep.subr.bf16.mxu0 %v3829_v47 }
  0x72   : > { %3163 = vmatmul.mubr.msk.bf16.gmra.mxu1 %vm904_vm0, %v3762_v3  ;;  %1742 = vmatpush1.bf16.msra.mxu0 %v3827_v48  ;;  %v4402_v3 = vshrl.u32 %v489_v63, 7 }
  0x73   : > { %1275 = vmatprep.mubr.bf16.mxu1 %v5214_v2 }
  0x74   : > { %5222 = vst [vmem:[#allocation7_spill] sm:$0xff] %v4402_v3 }
  0x75   : > { %1023 = vmatmul.mubr.bf16.gmra.mxu0 %v3741_v61 }
  0x76   : > { %1032 = vmatprep.mubr.bf16.mxu0 %v3743_v62 }
  0x7a   : > { %3164 = vmatmul.mubr.msk.bf16.gmra.mxu1 %vm904_vm0, %v3766_v6  ;;  %v5212_v6 = vsub.s32 0, %v4402_v3 }
  0x7b   : > { %1285 = vmatprep.mubr.bf16.mxu1 %v5214_v2 }
  0x7d   : > { %1033 = vmatmul.mubr.bf16.gmra.mxu0 %v3745_v0 }
  0x7e   : > { %1042 = vmatprep.mubr.bf16.mxu0 %v3747_v1 }
  0x82   : > { %3165 = vmatmul.mubr.msk.bf16.gmra.mxu1 %vm904_vm0, %v3770_v9  ;;  %v5213_v9 = vsub.s32 1, %v4402_v3 }
  0x83   : > { %1295 = vmatprep.mubr.bf16.mxu1 %v5214_v2 }
  0x85   : > { %1043 = vmatmul.mubr.bf16.gmra.mxu0 %v3749_v4 }
  0x86   : > { %1052 = vmatprep.mubr.bf16.mxu0 %v3751_v5 }
  0x8a   : > { %3166 = vmatmul.mubr.msk.bf16.gmra.mxu1 %vm904_vm0, %v3774_v12 }
  0x8b   : > { %1305 = vmatprep.mubr.bf16.mxu1 %v5214_v2 }
  0x8d   : > { %1053 = vmatmul.mubr.bf16.gmra.mxu0 %v3753_v7 }
  0x8e   : > { %1062 = vmatprep.mubr.bf16.mxu0 %v3755_v8  ;;  %v487_v8 = vld [vmem:[%s5201_s2] sm:$0x3] }
  0x92   : > { %3167 = vmatmul.mubr.msk.bf16.gmra.mxu1 %vm904_vm0, %v3781_v15 }
  0x93   : > { %1580 = vmatprep.mubr.bf16.mxu1 %v5214_v2 }
  0x95   : > { %1063 = vmatmul.mubr.bf16.gmra.mxu0 %v3757_v10 }
  0x96   : > { %1072 = vmatprep.mubr.bf16.mxu0 %v3759_v11  ;;  %v4419_v11 = vrot.slane %v487_v8, %v5212_v6 }
  0x9d   : > { %1073 = vmatmul.mubr.bf16.gmra.mxu0 %v3761_v13  ;;  %v4425_v13 = vrot.slane %v487_v8, %v5213_v9 }
  0x9e   : > { %1082 = vmatprep.mubr.bf16.mxu0 %v3763_v14 }
  0xa5   : > { %1083 = vmatmul.mubr.bf16.gmra.mxu0 %v3765_v16 }
  0xa6   : > { %1092 = vmatprep.mubr.bf16.mxu0 %v3767_v17 }
  0xad   : > { %1093 = vmatmul.mubr.bf16.gmra.mxu0 %v3769_v20 }
  0xae   : > { %1102 = vmatprep.mubr.bf16.mxu0 %v3771_v21 }
  0xb5   : > { %1103 = vmatmul.mubr.bf16.gmra.mxu0 %v3773_v24 }
  0xb6   : > { %1112 = vmatprep.mubr.bf16.mxu0 %v3775_v25 }
  0xbd   : > { %1113 = vmatmul.mubr.bf16.gmra.mxu0 %v3777_v28 }
  0xbe   : > { %1122 = vmatprep.mubr.bf16.mxu0 %v3778_v29 }
  0xc5   : > { %1123 = vmatmul.mubr.bf16.gmra.mxu0 %v3780_v34 }
  0xc6   : > { %1759 = vmatprep.mubr.bf16.mxu0 %v5214_v2 }
  0xe2   : > { %v1167_v52 = vpop.f32.mrf.mxu1 }
  0xe4   : > { %v1169_v53 = vpop.f32.mrf.mxu1 }
  0xe6   : > { %v4380_v54 = vpop.f32.mrf.mxu1 }
  0xe8   : > { %v4382_v55 = vpop.f32.mrf.mxu1 }
  0xea   : > { %v4384_v56 = vpop.f32.mrf.mxu1 }
  0xec   : > { %v4386_v57 = vpop.f32.mrf.mxu1 }
  0xee   : > { %v4388_v58 = vpop.f32.mrf.mxu1 }
  0xf0   : > { %v4390_v59 = vpop.f32.mrf.mxu1 }
  0xf2   : > { %v4392_v60 = vpop.f32.mrf.mxu1 }
  0xf4   : > { %v4394_v61 = vpop.f32.mrf.mxu1 }
  0xf6   : > { %v4396_v62 = vpop.f32.mrf.mxu1 }
  0xf8   : > { %v4398_v0 = vpop.f32.mrf.mxu1 }
  0xfa   : > { %v4400_v1 = vpop.f32.mrf.mxu1 }
  0xfc   : > { %v4404_v4 = vpop.f32.mrf.mxu1 }
  0xfe   : > { %v4406_v5 = vpop.f32.mrf.mxu1 }
 0x100   : > { %v4409_v7 = vpop.f32.mrf.mxu1 }
 0x102   : > { %v4415_v10 = vpop.f32.mrf.mxu1 }
 0x103   : > { %5223 = vst [vmem:[#allocation8_spill] sm:$0xff] %v4415_v10 }
 0x104   : > { %v4421_v12 = vpop.f32.mrf.mxu1 }
 0x105   : > { %5224 = vst [vmem:[#allocation9_spill] sm:$0xff] %v4421_v12 }
 0x106   : > { %v4427_v14 = vpop.f32.mrf.mxu1 }
 0x107   : > { %5225 = vst [vmem:[#allocation10_spill] sm:$0xff] %v4427_v14 }
 0x108   : > { %v4430_v17 = vpop.f32.mrf.mxu1 }
 0x109   : > { %5226 = vst [vmem:[#allocation11_spill] sm:$0xff] %v4430_v17 }
 0x10a   : > { %v4433_v21 = vpop.f32.mrf.mxu1 }
 0x10b   : > { %5227 = vst [vmem:[#allocation12_spill] sm:$0xff] %v4433_v21 }
 0x10c   : > { %v4435_v24 = vpop.f32.mrf.mxu1 }
 0x10d   : > { %5228 = vst [vmem:[#allocation13_spill] sm:$0xff] %v4435_v24 }
 0x10e   : > { %v4437_v28 = vpop.f32.mrf.mxu1 }
 0x10f   : > { %5229 = vst [vmem:[#allocation14_spill] sm:$0xff] %v4437_v28 }
 0x110   : > { %v4443_v31 = vpop.f32.mrf.mxu1 }
 0x111   : > { %5230 = vst [vmem:[#allocation15_spill] sm:$0xff] %v4443_v31 }
 0x112   : > { %v4447_v33 = vpop.f32.mrf.mxu1 }
 0x113   : > { %5231 = vst [vmem:[#allocation16_spill] sm:$0xff] %v4447_v33 }
 0x114   : > { %v4451_v35 = vpop.f32.mrf.mxu1 }
 0x115   : > { %v984_v15 = vpop.f32.mrf.mxu0  ;;  %5232 = vst [vmem:[#allocation17_spill] sm:$0xff] %v4451_v35 }
 0x116   : > { %v985_v16 = vadd.f32 %v984_v15, %v4419_v11  ;;  %v1231_v37 = vpop.f32.mrf.mxu1 }
 0x117   : > { %v986_v18 = vpop.f32.mrf.mxu0 }
 0x118   : > { %v1168_v19 = vadd.f32 %v1167_v52, %v985_v16  ;;  %v987_v20 = vadd.f32 %v986_v18, %v4425_v13  ;;  %v1233_v39 = vpop.f32.mrf.mxu1 }
 0x119   : > { %v988_v22 = vpop.f32.mrf.mxu0 }
 0x11a   : > { %v1170_v23 = vadd.f32 %v1169_v53, %v987_v20  ;;  %v1316_v26 = vmax.f32 %v1168_v19, 0.0  ;;  %v1237_v41 = vpop.f32.mrf.mxu1  ;;  %v989_v17 = vadd.f32 %v988_v22, %v4419_v11 }
 0x11b   : > { %v990_v25 = vpop.f32.mrf.mxu0 }
 0x11c   : > { %v1317_v27 = vmax.f32 %v1170_v23, 0.0  ;;  %v1239_v43 = vpop.f32.mrf.mxu1 }
 0x11d   : > { %v4439_v29 = vpop.f32.mrf.mxu0 }
 0x11e   : > { %v4441_v30 = vmax.f32 %v1316_v26, %v1317_v27  ;;  %v1241_v45 = vpop.f32.mrf.mxu1 }
 0x11f   : > { %v4445_v32 = vpop.f32.mrf.mxu0 }
 0x120   : > { %v1243_v47 = vpop.f32.mrf.mxu1 }
 0x121   : > { %v4449_v34 = vpop.f32.mrf.mxu0 }
 0x122   : > { %v4467_v49 = vpop.f32.mrf.mxu1 }
 0x123   : > { %v4453_v36 = vpop.f32.mrf.mxu0 }
 0x124   : > { %v4471_v51 = vpop.f32.mrf.mxu1 }
 0x125   : > { %v4455_v38 = vpop.f32.mrf.mxu0 }
 0x126   : > { %v4475_v53 = vpop.f32.mrf.mxu1 }
 0x127   : > { %v4457_v40 = vpop.f32.mrf.mxu0 }
 0x128   : > { %v4479_v8 = vpop.f32.mrf.mxu1 }
 0x129   : > { %v4459_v42 = vpop.f32.mrf.mxu0 }
 0x12a   : > { %v4483_v16 = vpop.f32.mrf.mxu1 }
 0x12b   : > { %v4461_v44 = vpop.f32.mrf.mxu0 }
 0x12c   : > { %v4489_v20 = vpop.f32.mrf.mxu1 }
 0x12d   : > { %v4463_v46 = vpop.f32.mrf.mxu0 }
 0x12e   : > { %v4495_v27 = vpop.f32.mrf.mxu1 }
 0x12f   : > { %v4465_v48 = vpop.f32.mrf.mxu0 }
 0x130   : > { %v4501_v2 = vpop.f32.mrf.mxu1 }
 0x131   : > { %v4469_v50 = vpop.f32.mrf.mxu0 }
 0x132   : > { %v4507_v35 = vpop.f32.mrf.mxu1 }
 0x133   : > { %v4473_v52 = vpop.f32.mrf.mxu0 }
 0x134   : > { %v4510_v21 = vpop.f32.mrf.mxu1 }
 0x135   : > { %v4477_v63 = vpop.f32.mrf.mxu0 }
 0x136   : > { %5233 = vst [vmem:[#allocation18_spill] sm:$0xff] %v4477_v63 }
 0x137   : > { %v4481_v15 = vpop.f32.mrf.mxu0 }
 0x139   : > { %v4485_v18 = vpop.f32.mrf.mxu0 }
 0x13a   : > { %5234 = vst [vmem:[#allocation19_spill] sm:$0xff] %v4485_v18  ;;  %v4516_v18 = vpop.f32.mrf.mxu1 }
 0x13b   : > { %v4487_v19 = vpop.f32.mrf.mxu0 }
 0x13c   : > { %5235 = vst [vmem:[#allocation20_spill] sm:$0xff] %v4487_v19 }
 0x13d   : > { %v4491_v23 = vpop.f32.mrf.mxu0 }
 0x13e   : > { %5236 = vst [vmem:[#allocation21_spill] sm:$0xff] %v4491_v23 }
 0x13f   : > { %v4493_v26 = vpop.f32.mrf.mxu0 }
 0x140   : > { %5237 = vst [vmem:[#allocation22_spill] sm:$0xff] %v4493_v26 }
 0x141   : > { %v4497_v6 = vpop.f32.mrf.mxu0 }
 0x142   : > { %5238 = vst [vmem:[#allocation23_spill] sm:$0xff] %v4497_v6 }
 0x143   : > { %v4499_v9 = vpop.f32.mrf.mxu0 }
 0x144   : > { %5239 = vst [vmem:[#allocation24_spill] sm:$0xff] %v4499_v9 }
 0x145   : > { %v4503_v3 = vpop.f32.mrf.mxu0 }
 0x146   : > { %5240 = vst [vmem:[#allocation25_spill] sm:$0xff] %v4503_v3  ;;  %v991_v3 = vadd.f32 %v990_v25, %v4425_v13  ;;  %v995_v25 = vadd.f32 %v4439_v29, %v4419_v11 }
 0x147   : > { %v4505_v33 = vpop.f32.mrf.mxu0 }
 0x148   : > { %5241 = vst [vmem:[#allocation26_spill] sm:$0xff] %v4505_v33  ;;  %v1174_v22 = vadd.f32 %v4382_v55, %v991_v3 }
 0x149   : > { %v1048_v28 = vpop.f32.mrf.mxu0 }
 0x14a   : > { %v1049_v31 = vadd.f32 %v1048_v28, %v4419_v11 }
 0x14b   : > { %v1050_v24 = vpop.f32.mrf.mxu0 }
 0x14c   : > { %v1232_v14 = vadd.f32 %v1231_v37, %v1049_v31  ;;  %v1051_v26 = vadd.f32 %v1050_v24, %v4425_v13 }
 0x14d   : > { %v1054_v6 = vpop.f32.mrf.mxu0 }
 0x14e   : > { %v1234_v23 = vadd.f32 %v1233_v39, %v1051_v26  ;;  %v1055_v9 = vadd.f32 %v1054_v6, %v4419_v11  ;;  %v1342_v19 = vmax.f32 %v1232_v14, 0.0  ;;  %v1172_v6 = vadd.f32 %v4380_v54, %v989_v17  ;;  %v4526_v26 = vpop.f32.mrf.mxu1 }
 0x14f   : > { %v1056_v33 = vpop.f32.mrf.mxu0  ;;  %v1001_v54 = vadd.f32 %v4453_v36, %v4425_v13 }
 0x150   : > { %v1343_v10 = vmax.f32 %v1234_v23, 0.0  ;;  %v1238_v28 = vadd.f32 %v1237_v41, %v1055_v9  ;;  %v1057_v12 = vadd.f32 %v1056_v33, %v4425_v13  ;;  %v997_v9 = vadd.f32 %v4445_v32, %v4425_v13  ;;  %v4539_v23 = vpop.f32.mrf.mxu1 }
 0x151   : > { %v1058_v63 = vpop.f32.mrf.mxu0  ;;  %v1178_v32 = vadd.f32 %v4384_v56, %v995_v25  ;;  %v1007_v56 = vadd.f32 %v4457_v40, %v4425_v13 }
 0x152   : > { %v4519_v31 = vmax.f32 %v1342_v19, %v1343_v10  ;;  %v1240_v24 = vadd.f32 %v1239_v43, %v1057_v12  ;;  %v1059_v37 = vadd.f32 %v1058_v63, %v4419_v11  ;;  %v1344_v14 = vmax.f32 %v1238_v28, 0.0 }
 0x153   : > { %v1060_v39 = vpop.f32.mrf.mxu0  ;;  %v999_v12 = vadd.f32 %v4449_v34, %v4419_v11  ;;  %v1318_v43 = vmax.f32 %v1172_v6, 0.0  ;;  %v1319_v63 = vmax.f32 %v1174_v22, 0.0  ;;  %v1180_v28 = vadd.f32 %v4386_v57, %v997_v9 }
 0x154   : > { %v1345_v33 = vmax.f32 %v1240_v24, 0.0  ;;  %v1061_v10 = vadd.f32 %v1060_v39, %v4425_v13  ;;  %v1242_v55 = vadd.f32 %v1241_v45, %v1059_v37  ;;  %v1005_v37 = vadd.f32 %v4455_v38, %v4419_v11 }
 0x155   : > { %v1064_v3 = vpop.f32.mrf.mxu0  ;;  %v1182_v45 = vadd.f32 %v4388_v58, %v999_v12  ;;  %v1377_v39 = vmax.f32 %v1318_v43, %v1319_v63  ;;  %v1321_v12 = vmax.f32 %v1180_v28, 0.0  ;;  %v1009_v63 = vadd.f32 %v4459_v42, %v4419_v11 }
 0x156   : > { %v4535_v17 = vmax.f32 %v1344_v14, %v1345_v33  ;;  %v1244_v29 = vadd.f32 %v1243_v47, %v1061_v10  ;;  %v1065_v41 = vadd.f32 %v1064_v3, %v4419_v11  ;;  %v1184_v47 = vadd.f32 %v4390_v59, %v1001_v54  ;;  %v4552_v33 = vpop.f32.mrf.mxu1 }
 0x157   : > { %v1066_v19 = vpop.f32.mrf.mxu0  ;;  %v1346_v6 = vmax.f32 %v1242_v55, 0.0  ;;  %v1322_v54 = vmax.f32 %v1182_v45, 0.0  ;;  %v1188_v40 = vadd.f32 %v4392_v60, %v1005_v37  ;;  %v1190_v3 = vadd.f32 %v4394_v61, %v1007_v56 }
 0x158   : > { %v1347_v34 = vmax.f32 %v1244_v29, 0.0  ;;  %v1248_v24 = vadd.f32 %v4467_v49, %v1065_v41  ;;  %v1067_v36 = vadd.f32 %v1066_v19, %v4425_v13  ;;  %v1320_v49 = vmax.f32 %v1178_v32, 0.0 }
 0x159   : > { %v1068_v22 = vpop.f32.mrf.mxu0  ;;  %v1323_v55 = vmax.f32 %v1184_v47, 0.0  ;;  %v1324_v37 = vmax.f32 %v1188_v40, 0.0 }
 0x15a   : > { %v1250_v25 = vadd.f32 %v4471_v51, %v1067_v36  ;;  %v1069_v57 = vadd.f32 %v1068_v22, %v4419_v11  ;;  %v1391_v9 = vmax.f32 %v1346_v6, %v1347_v34  ;;  %v1348_v58 = vmax.f32 %v1248_v24, 0.0  ;;  %v4565_v34 = vpop.f32.mrf.mxu1 }
 0x15b   : > { %v1070_v14 = vpop.f32.mrf.mxu0  ;;  %v1378_v36 = vmax.f32 %v1320_v49, %v1321_v12  ;;  %v1379_v45 = vmax.f32 %v1322_v54, %v1323_v55  ;;  %v1325_v22 = vmax.f32 %v1190_v3, 0.0 }
 0x15c   : > { %v1349_v59 = vmax.f32 %v1250_v25, 0.0  ;;  %v1252_v10 = vadd.f32 %v4475_v53, %v1069_v57  ;;  %v1071_v38 = vadd.f32 %v1070_v14, %v4425_v13  ;;  %v1011_v53 = vadd.f32 %v4461_v44, %v4425_v13 }
 0x15d   : > { %v1074_v51 = vpop.f32.mrf.mxu0  ;;  %v1406_v32 = vmax.f32 %v4441_v30, %v1391_v9  ;;  %v1192_v30 = vadd.f32 %v4396_v62, %v1009_v63  ;;  %v1021_v62 = vadd.f32 %v4473_v52, %v4425_v13  ;;  %v1380_v52 = vmax.f32 %v1324_v37, %v1325_v22 }
 0x15e   : > { %v1392_v29 = vmax.f32 %v1348_v58, %v1349_v59  ;;  %v1254_v41 = vadd.f32 %v4479_v8, %v1071_v38  ;;  %v1075_v43 = vadd.f32 %v1074_v51, %v4419_v11  ;;  %v1350_v19 = vmax.f32 %v1252_v10, 0.0  ;;  %v3830_v10 = vld [vmem:[%s5202_s3 + $0x170] ss:$8 sps:$4 sm:$0xff]  }
 0x15f   : > { %v1076_v28 = vpop.f32.mrf.mxu0  ;;  %v1194_v56 = vadd.f32 %v4398_v0, %v1011_v53  ;;  %v1015_v58 = vadd.f32 %v4463_v46, %v4419_v11  ;;  %v5242_v38 = vmov 0   ;;  %v1326_v63 = vmax.f32 %v1192_v30, 0.0 }
 0x160   : > { %v1407_v60 = vmax.f32 %v1377_v39, %v1392_v29  ;;  %v1351_v24 = vmax.f32 %v1254_v41, 0.0  ;;  %v1258_v61 = vadd.f32 %v4483_v16, %v1075_v43  ;;  %v1077_v8 = vadd.f32 %v1076_v28, %v4425_v13  ;;  %v4573_v39 = vpop.f32.mrf.mxu1 }
 0x161   : > { %v1078_v47 = vpop.f32.mrf.mxu0  ;;  %v1327_v53 = vmax.f32 %v1194_v56, 0.0 }
 0x162   : > { %v1437_v42 = vpack.c.bf16 %v1407_v60, %v1406_v32  ;;  %v1393_v6 = vmax.f32 %v1350_v19, %v1351_v24  ;;  %v1260_v44 = vadd.f32 %v4489_v20, %v1077_v8  ;;  %v1079_v25 = vadd.f32 %v1078_v47, %v4419_v11  ;;  %v4594_v3 = vpop.f32.mrf.mxu1 }
 0x163   : > { %v1080_v57 = vpop.f32.mrf.mxu0  ;;  %v1352_v9 = vmax.f32 %v1258_v61, 0.0  ;;  %v1017_v20 = vadd.f32 %v4465_v48, %v4425_v13  ;;  %v3835_v48 = vld [vmem:[%s5202_s3 + $0x164] ss:$8 sps:$4 sm:$0xff]   ;;  %v1204_v19 = vadd.f32 %v4409_v7, %v1021_v62  ;;  %v1027_v8 = vadd.f32 %v4481_v15, %v4425_v13 }
 0x164   : > { %v1408_v16 = vmax.f32 %v1378_v36, %v1393_v6  ;;  %v1353_v49 = vmax.f32 %v1260_v44, 0.0  ;;  %v1081_v14 = vadd.f32 %v1080_v57, %v4425_v13  ;;  %1760 = vmatmul.mubr.bf16.vlgmr.msra.gmra.mxu0 %v1437_v42  ;;  %v1262_v0 = vadd.f32 %v4495_v27, %v1079_v25 }
 0x165   : > { %v1084_v59 = vpop.f32.mrf.mxu0  ;;  %1769 = vmatprep.mubr.bf16.mxu0 %v5242_v38  ;;  %v1019_v27 = vadd.f32 %v4469_v50, %v4419_v11  ;;  %v1200_v32 = vadd.f32 %v4404_v4, %v1017_v20  ;;  %v3833_v50 = vld [vmem:[%s5202_s3 + $0x160] ss:$8 sps:$4 sm:$0xff]   ;;  %v3838_v4 = vld [vmem:[%s5202_s3 + $0x154] ss:$8 sps:$4 sm:$0xff]   ;;  %v1381_v44 = vmax.f32 %v1326_v63, %v1327_v53  ;;  %v1331_v30 = vmax.f32 %v1204_v19, 0.0 }
 0x166   : > { %v1461_v12 = vpack.c.bf16 %v1408_v16, %v1407_v60  ;;  %v1394_v54 = vmax.f32 %v1352_v9, %v1353_v49  ;;  %v1264_v55 = vadd.f32 %v4501_v2, %v1081_v14  ;;  %v1085_v46 = vadd.f32 %v1084_v59, %v4419_v11  ;;  %v5244_v14 = vld [vmem:[#allocation9_spill] sm:$0xff]  ;;  %v5247_v53 = vld [vmem:[#allocation19_spill] sm:$0xff] }
 0x167   : > { %v1354_v40 = vmax.f32 %v1262_v0, 0.0  ;;  %v1086_v51 = vpop.f32.mrf.mxu0  ;;  %v1202_v7 = vadd.f32 %v4406_v5, %v1019_v27  ;;  %v1329_v22 = vmax.f32 %v1200_v32, 0.0  ;;  %v5243_v5 = vld [vmem:[#allocation18_spill] sm:$0xff]  ;;  %v1029_v32 = vadd.f32 %v5247_v53, %v4419_v11 }
 0x168   : > { %v1355_v29 = vmax.f32 %v1264_v55, 0.0  ;;  %v1268_v41 = vadd.f32 %v4507_v35, %v1085_v46  ;;  %v1087_v43 = vadd.f32 %v1086_v51, %v4425_v13  ;;  %1581 = vmatmul.mubr.bf16.vlgmr.msra.gmra.mxu1 %v1461_v12  ;;  %v1409_v2 = vmax.f32 %v1379_v45, %v1394_v54 }
 0x169   : > { %1926 = vmatpush1.bf16.msra.mxu1 %v3830_v10  ;;  %v1088_v28 = vpop.f32.mrf.mxu0  ;;  %1590 = vmatprep.mubr.bf16.mxu1 %v5242_v38  ;;  %v1198_v35 = vadd.f32 %v4400_v1, %v1015_v58  ;;  %v4615_v1 = vpop.f32.mrf.mxu1  ;;  %v1025_v56 = vadd.f32 %v5243_v5, %v4419_v11  ;;  %v1330_v49 = vmax.f32 %v1202_v7, 0.0  ;;  %v1210_v58 = vadd.f32 %v5244_v14, %v1027_v8  ;;  %v5248_v8 = vld [vmem:[#allocation11_spill] sm:$0xff] }
 0x16a   : > { %v1395_v60 = vmax.f32 %v1354_v40, %v1355_v29  ;;  %v1270_v24 = vadd.f32 %v4510_v21, %v1087_v43  ;;  %v1089_v61 = vadd.f32 %v1088_v28, %v4419_v11  ;;  %1927 = vmatprep.subr.bf16.mxu1 %v3835_v48  ;;  %v1356_v36 = vmax.f32 %v1268_v41, 0.0  ;;  %v5246_v40 = vld [vmem:[#allocation20_spill] sm:$0xff] }
 0x16b   : > { %v1090_v45 = vpop.f32.mrf.mxu0  ;;  %v4613_v47 = vpack.c.bf16 %v1409_v2, %v1408_v16  ;;  %v1328_v25 = vmax.f32 %v1198_v35, 0.0  ;;  %v4629_v59 = vpop.f32.mrf.mxu1  ;;  %v1383_v48 = vmax.f32 %v1330_v49, %v1331_v30  ;;  %v1031_v51 = vadd.f32 %v5246_v40, %v4425_v13  ;;  %v3842_v30 = vld [vmem:[%s5202_s3 + $0x130] ss:$8 sps:$4 sm:$0xff]  }
 0x16c   : > { %v1357_v37 = vmax.f32 %v1270_v24, 0.0  ;;  %v1272_v21 = vadd.f32 %v4516_v18, %v1089_v61  ;;  %v1091_v42 = vadd.f32 %v1090_v45, %v4425_v13  ;;  %v1410_v6 = vmax.f32 %v1380_v52, %v1395_v60  ;;  %v3836_v18 = vld [vmem:[%s5202_s3 + $0x150] ss:$8 sps:$4 sm:$0xff]   ;;  %v5249_v45 = vld [vmem:[#allocation21_spill] sm:$0xff] }
 0x16d   : > { %1770 = vmatmul.mubr.bf16.gmra.mxu0 %v4613_v47  ;;  %v1094_v15 = vpop.f32.mrf.mxu0  ;;  %1928 = vmatpush1.bf16.msra.mxu1 %v3833_v50  ;;  %v1382_v46 = vmax.f32 %v1328_v25, %v1329_v22  ;;  %v5245_v52 = vld [vmem:[#allocation8_spill] sm:$0xff]  ;;  %v1333_v63 = vmax.f32 %v1210_v58, 0.0  ;;  %v4649_v35 = vpop.f32.mrf.mxu1  ;;  %v5255_v40 = vld [vmem:[#allocation23_spill] sm:$0xff] }
 0x16e   : > { %v1396_v57 = vmax.f32 %v1356_v36, %v1357_v37  ;;  %v1274_v16 = vadd.f32 %v4526_v26, %v1091_v42  ;;  %v1095_v9 = vadd.f32 %v1094_v15, %v4419_v11  ;;  %1779 = vmatprep.mubr.bf16.mxu0 %v5242_v38  ;;  %1929 = vmatprep.subr.bf16.mxu1 %v3838_v4  ;;  %v1358_v20 = vmax.f32 %v1272_v21, 0.0  ;;  %v3841_v26 = vld [vmem:[%s5202_s3 + $0x144] ss:$8 sps:$4 sm:$0xff]  }
 0x16f   : > { %v1096_v62 = vpop.f32.mrf.mxu0  ;;  %v1462_v0 = vpack.c.bf16 %v1410_v6, %v1409_v2  ;;  %v1208_v27 = vadd.f32 %v5245_v52, %v1025_v56  ;;  %v1214_v36 = vadd.f32 %v5248_v8, %v1031_v51  ;;  %v1035_v37 = vadd.f32 %v5249_v45, %v4419_v11  ;;  %v5250_v21 = vld [vmem:[#allocation22_spill] sm:$0xff] }
 0x170   : > { %v1359_v10 = vmax.f32 %v1274_v16, 0.0  ;;  %v1278_v12 = vadd.f32 %v4539_v23, %v1095_v9  ;;  %v1097_v54 = vadd.f32 %v1096_v62, %v4425_v13  ;;  %v1411_v55 = vmax.f32 %v1381_v44, %v1396_v57  ;;  %v3839_v23 = vld [vmem:[%s5202_s3 + $0x140] ss:$8 sps:$4 sm:$0xff]   ;;  %v1297_v9 = vpop.f32.mrf.mxu1  ;;  %v5252_v62 = vld [vmem:[#allocation12_spill] sm:$0xff] }
 0x171   : > { %1591 = vmatmul.mubr.bf16.gmra.mxu1 %v1462_v0  ;;  %v1098_v29 = vpop.f32.mrf.mxu0  ;;  %v1332_v7 = vmax.f32 %v1208_v27, 0.0  ;;  %v1037_v42 = vadd.f32 %v5250_v21, %v4425_v13  ;;  %v5251_v56 = vld [vmem:[#allocation10_spill] sm:$0xff]  ;;  %v1218_v0 = vadd.f32 %v5252_v62, %v1035_v37  ;;  %v1039_v51 = vadd.f32 %v5255_v40, %v4419_v11 }
 0x172   : > { %v1397_v41 = vmax.f32 %v1358_v20, %v1359_v10  ;;  %v1280_v43 = vadd.f32 %v4552_v33, %v1097_v54  ;;  %v1099_v2 = vadd.f32 %v1098_v29, %v4419_v11  ;;  %1930 = vmatpush1.bf16.msra.mxu1 %v3836_v18  ;;  %1600 = vmatprep.mubr.bf16.mxu1 %v5242_v38  ;;  %v1360_v19 = vmax.f32 %v1278_v12, 0.0  ;;  %v3844_v33 = vld [vmem:[%s5202_s3 + $0x134] ss:$8 sps:$4 sm:$0xff]   ;;  %v5258_v37 = vld [vmem:[#allocation14_spill] sm:$0xff] }
 0x173   : > { %v1100_v28 = vpop.f32.mrf.mxu0  ;;  %v4647_v50 = vpack.c.bf16 %v1411_v55, %v1410_v6  ;;  %1931 = vmatprep.subr.bf16.mxu1 %v3841_v26  ;;  %v1384_v5 = vmax.f32 %v1332_v7, %v1333_v63  ;;  %v1212_v15 = vadd.f32 %v5251_v56, %v1029_v32  ;;  %v1335_v20 = vmax.f32 %v1214_v36, 0.0  ;;  %v5253_v26 = vld [vmem:[#allocation13_spill] sm:$0xff]  ;;  %v5254_v12 = vld [vmem:[#allocation24_spill] sm:$0xff] }
 0x174   : > { %v1361_v60 = vmax.f32 %v1280_v43, 0.0  ;;  %v1282_v24 = vadd.f32 %v4565_v34, %v1099_v2  ;;  %v1101_v61 = vadd.f32 %v1100_v28, %v4425_v13  ;;  %v1412_v4 = vmax.f32 %v1382_v46, %v1397_v41  ;;  %v1299_v43 = vpop.f32.mrf.mxu1 }
 0x175   : > { %1780 = vmatmul.mubr.bf16.gmra.mxu0 %v4647_v50  ;;  %v1104_v6 = vpop.f32.mrf.mxu0  ;;  %v1220_v10 = vadd.f32 %v5253_v26, %v1037_v42  ;;  %v1041_v54 = vadd.f32 %v5254_v12, %v4425_v13  ;;  %v1336_v7 = vmax.f32 %v1218_v0, 0.0  ;;  %v1222_v21 = vadd.f32 %v5258_v37, %v1039_v51  ;;  %v5259_v42 = vld [vmem:[#allocation25_spill] sm:$0xff]  ;;  %v5261_v0 = vld [vmem:[#allocation16_spill] sm:$0xff] }
 0x176   : > { %v1398_v44 = vmax.f32 %v1360_v19, %v1361_v60  ;;  %v1284_v22 = vadd.f32 %v4573_v39, %v1101_v61  ;;  %v1105_v34 = vadd.f32 %v1104_v6, %v4419_v11  ;;  %1789 = vmatprep.mubr.bf16.mxu0 %v5242_v38  ;;  %1932 = vmatpush1.bf16.msra.mxu1 %v3839_v23  ;;  %v1362_v25 = vmax.f32 %v1282_v24, 0.0  ;;  %v3847_v39 = vld [vmem:[%s5202_s3 + $0x124] ss:$8 sps:$4 sm:$0xff]  }
 0x177   : > { %v1106_v57 = vpop.f32.mrf.mxu0  ;;  %v1463_v16 = vpack.c.bf16 %v1412_v4, %v1411_v55  ;;  %1933 = vmatprep.subr.bf16.mxu1 %v3844_v33  ;;  %v1337_v28 = vmax.f32 %v1220_v10, 0.0  ;;  %v5256_v33 = vld [vmem:[#allocation15_spill] sm:$0xff]  ;;  %v5257_v24 = vld [vmem:[#allocation26_spill] sm:$0xff]  ;;  %v1045_v6 = vadd.f32 %v5259_v42, %v4419_v11  ;;  %v1338_v62 = vmax.f32 %v1222_v21, 0.0 }
 0x178   : > { %v1363_v18 = vmax.f32 %v1284_v22, 0.0  ;;  %v1288_v49 = vadd.f32 %v4594_v3, %v1105_v34  ;;  %v1107_v14 = vadd.f32 %v1106_v57, %v4425_v13  ;;  %v1413_v58 = vmax.f32 %v1383_v48, %v1398_v44  ;;  %v3845_v3 = vld [vmem:[%s5202_s3 + $0x120] ss:$8 sps:$4 sm:$0xff]   ;;  %v1301_v22 = vpop.f32.mrf.mxu1 }
 0x179   : > { %1601 = vmatmul.mubr.bf16.gmra.mxu1 %v1463_v16  ;;  %v1108_v55 = vpop.f32.mrf.mxu0  ;;  %v1334_v48 = vmax.f32 %v1212_v15, 0.0  ;;  %v1224_v60 = vadd.f32 %v5256_v33, %v1041_v54  ;;  %v1047_v61 = vadd.f32 %v5257_v24, %v4425_v13  ;;  %v1386_v57 = vmax.f32 %v1336_v7, %v1337_v28 }
 0x17a   : > { %v1399_v46 = vmax.f32 %v1362_v25, %v1363_v18  ;;  %v1290_v52 = vadd.f32 %v4615_v1, %v1107_v14  ;;  %v1109_v27 = vadd.f32 %v1108_v55, %v4419_v11  ;;  %1610 = vmatprep.mubr.bf16.mxu1 %v5242_v38  ;;  %1934 = vmatpush1.bf16.msra.mxu1 %v3842_v30  ;;  %v1364_v29 = vmax.f32 %v1288_v49, 0.0  ;;  %v3850_v1 = vld [vmem:[%s5202_s3 + $0x114] ss:$8 sps:$4 sm:$0xff]   ;;  %v1303_v12 = vpop.f32.mrf.mxu1 }
 0x17b   : > { %v1110_v41 = vpop.f32.mrf.mxu0  ;;  %v4686_v2 = vpack.c.bf16 %v1413_v58, %v1412_v4  ;;  %1935 = vmatprep.subr.bf16.mxu1 %v3847_v39  ;;  %v1385_v19 = vmax.f32 %v1334_v48, %v1335_v20  ;;  %v1339_v16 = vmax.f32 %v1224_v60, 0.0  ;;  %v5260_v39 = vld [vmem:[#allocation17_spill] sm:$0xff]  ;;  %v1228_v26 = vadd.f32 %v5261_v0, %v1045_v6  ;;  %v3866_v0 = vld [vmem:[%s5204_s5 + $0x8] sm:$0xff]  }
 0x17c   : > { %v1365_v23 = vmax.f32 %v1290_v52, 0.0  ;;  %v1292_v63 = vadd.f32 %v4629_v59, %v1109_v27  ;;  %v1111_v53 = vadd.f32 %v1110_v41, %v4425_v13  ;;  %v1414_v32 = vmax.f32 %v1384_v5, %v1399_v46  ;;  %v3848_v59 = vld [vmem:[%s5202_s3 + $0x110] ss:$8 sps:$4 sm:$0xff]   ;;  %v1307_v51 = vpop.f32.mrf.mxu1 }
 0x17d   : > { %1790 = vmatmul.mubr.bf16.gmra.mxu0 %v4686_v2  ;;  %v1114_v4 = vpop.f32.mrf.mxu0  ;;  %v1230_v18 = vadd.f32 %v5260_v39, %v1047_v61  ;;  %v1387_v48 = vmax.f32 %v1338_v62, %v1339_v16  ;;  %v3856_v39 = vld [vmem:[%s5204_s5 + $0x70] sm:$0xff]  }
 0x17e   : > { %v1400_v8 = vmax.f32 %v1364_v29, %v1365_v23  ;;  %v1294_v36 = vadd.f32 %v4649_v35, %v1111_v53  ;;  %v1115_v45 = vadd.f32 %v1114_v4, %v4419_v11  ;;  %1799 = vmatprep.mubr.bf16.mxu0 %v5242_v38  ;;  %1936 = vmatpush1.bf16.msra.mxu1 %v3845_v3  ;;  %v1366_v44 = vmax.f32 %v1292_v63, 0.0  ;;  %v3853_v35 = vld [vmem:[%s5202_s3 + $0x104] ss:$8 sps:$4 sm:$0xff]   ;;  %v1309_v24 = vpop.f32.mrf.mxu1  ;;  %v3865_v62 = vld [vmem:[%s5204_s5 + $0x10] sm:$0xff]  }
 0x17f   : > { %v1116_v34 = vpop.f32.mrf.mxu0  ;;  %v1464_v30 = vpack.c.bf16 %v1414_v32, %v1413_v58  ;;  %1937 = vmatprep.subr.bf16.mxu1 %v3850_v1  ;;  %v1341_v29 = vmax.f32 %v1230_v18, 0.0  ;;  %v1340_v23 = vmax.f32 %v1228_v26, 0.0  ;;  %v3857_v18 = vld [vmem:[%s5204_s5 + $0x30] sm:$0xff]  }
 0x180   : > { %v1367_v5 = vmax.f32 %v1294_v36, 0.0  ;;  %v1298_v56 = vadd.f32 %v1297_v9, %v1115_v45  ;;  %v1117_v15 = vadd.f32 %v1116_v34, %v4425_v13  ;;  %v1415_v25 = vmax.f32 %v1385_v19, %v1400_v8  ;;  %v3851_v9 = vld [vmem:[%s5202_s3 + $0x100] ss:$8 sps:$4 sm:$0xff]   ;;  %v1311_v34 = vpop.f32.mrf.mxu1  ;;  %v3864_v26 = vld [vmem:[%s5204_s5 + $0x50] sm:$0xff]  }
 0x181   : > { %1611 = vmatmul.mubr.bf16.gmra.mxu1 %v1464_v30  ;;  %v1118_v49 = vpop.f32.mrf.mxu0  ;;  %v1388_v61 = vmax.f32 %v1340_v23, %v1341_v29 }
 0x182   : > { %v1401_v14 = vmax.f32 %v1366_v44, %v1367_v5  ;;  %v1300_v20 = vadd.f32 %v1299_v43, %v1117_v15  ;;  %v1119_v58 = vadd.f32 %v1118_v49, %v4419_v11  ;;  %1620 = vmatprep.mubr.bf16.mxu1 %v5242_v38  ;;  %1938 = vmatpush1.bf16.msra.mxu1 %v3848_v59  ;;  %v1368_v10 = vmax.f32 %v1298_v56, 0.0 }
 0x183   : > { %v1120_v54 = vpop.f32.mrf.mxu0  ;;  %v1441_v55 = vpack.c.bf16 %v1415_v25, %v1414_v32  ;;  %1939 = vmatprep.subr.bf16.mxu1 %v3853_v35  ;;  %v1313_v35 = vpop.f32.mrf.mxu1 }
 0x184   : > { %v1369_v46 = vmax.f32 %v1300_v20, 0.0  ;;  %v1302_v52 = vadd.f32 %v1301_v22, %v1119_v58  ;;  %v1121_v27 = vadd.f32 %v1120_v54, %v4425_v13  ;;  %v1416_v3 = vmax.f32 %v1386_v57, %v1401_v14  ;;  %v3860_v14 = vld [vmem:[%s5204_s5 + $0x60] sm:$0xff]   ;;  %v3862_v58 = vld [vmem:[%s5204_s5 + $0x58] sm:$0xff]  }
 0x185   : > { %1800 = vmatmul.mubr.bf16.gmra.mxu0 %v1441_v55  ;;  %v1124_v40 = vpop.f32.mrf.mxu0  ;;  %v3861_v20 = vld [vmem:[%s5204_s5 + $0x20] sm:$0xff]  }
 0x186   : > { %v1402_v41 = vmax.f32 %v1368_v10, %v1369_v46  ;;  %v1304_v43 = vadd.f32 %v1303_v12, %v1121_v27  ;;  %v1125_v1 = vadd.f32 %v1124_v40, %v4419_v11  ;;  %1809 = vmatprep.mubr.bf16.mxu0 %v5242_v38  ;;  %1940 = vmatpush1.bf16.msra.mxu1 %v3851_v9  ;;  %v1370_v63 = vmax.f32 %v1302_v52, 0.0  ;;  %v3863_v9 = vld [vmem:[%s5204_s5 + $0x18] sm:$0xff]   ;;  %v3868_v10 = vld [vmem:[%s5204_s5] sm:$0xff]   ;;  %v3867_v12 = vld [vmem:[%s5204_s5 + $0x48] sm:$0xff]  }
 0x187   : > { %v1126_v53 = vpop.f32.mrf.mxu0  ;;  %v1465_v32 = vpack.c.bf16 %v1416_v3, %v1415_v25  ;;  %v3979_v25 = vmov 0.0   ;;  %v3870_v54 = vld [vmem:[%s5204_s5 + $0x40] sm:$0xff]  }
 0x188   : > { %v1371_v19 = vmax.f32 %v1304_v43, 0.0  ;;  %v1308_v28 = vadd.f32 %v1307_v51, %v1125_v1  ;;  %v1127_v33 = vadd.f32 %v1126_v53, %v4425_v13  ;;  %v1417_v60 = vmax.f32 %v1387_v48, %v1402_v41  ;;  %3469 = vmatprep.subr.bf16.mxu0 %v3979_v25  ;;  %3489 = vmatprep.subr.bf16.mxu1 %v3979_v25 }
 0x189   : > { %1621 = vmatmul.mubr.bf16.gmra.mxu1 %v1465_v32  ;;  %v1128_v22 = vpop.f32.mrf.mxu0 }
 0x18a   : > { %v1403_v4 = vmax.f32 %v1370_v63, %v1371_v19  ;;  %v1310_v7 = vadd.f32 %v1309_v24, %v1127_v33  ;;  %1630 = vmatprep.mubr.bf16.mxu1 %v5242_v38  ;;  %v1372_v8 = vmax.f32 %v1308_v28, 0.0  ;;  %v1442_v36 = vpack.c.bf16 %v1417_v60, %v1416_v3 }
 0x18c   : > { %v1418_v45 = vmax.f32 %v1388_v61, %v1403_v4  ;;  %v1373_v59 = vmax.f32 %v1310_v7, 0.0 }
 0x18d   : > { %1810 = vmatmul.mubr.bf16.gmra.mxu0 %v1442_v36 }
 0x18e   : > { %v1466_v37 = vpack.c.bf16 %v1418_v45, %v1417_v60  ;;  %1819 = vmatprep.mubr.bf16.mxu0 %v5242_v38  ;;  %v1404_v21 = vmax.f32 %v1372_v8, %v1373_v59  ;;  %v1443_v6 = vpack.c.bf16 %v1418_v45, %v1418_v45 }
 0x190   : > { %v1419_v42 = vmax.f32 %v4519_v31, %v1404_v21  ;;  %v1130_v31 = vpop.f32.mrf.mxu0 }
 0x191   : > { %1631 = vmatmul.mubr.bf16.gmra.mxu1 %v1466_v37  ;;  %v1131_v30 = vadd.f32 %v1130_v31, %v4425_v13 }
 0x192   : > { %1640 = vmatprep.mubr.bf16.mxu1 %v5242_v38  ;;  %v1467_v44 = vpack.c.bf16 %v1419_v42, %v1419_v42  ;;  %v1843_v57 = vpack.c.bf16 %v1419_v42, %v1418_v45 }
 0x193   : > { %v1314_v5 = vadd.f32 %v1313_v35, %v1131_v30 }
 0x195   : > { %1820 = vmatmul.mubr.bf16.gmra.mxu0 %v1443_v6 }
 0x196   : > { %3485 = vmatprep.mubr.msk.bf16.mxu0 %vm3980_vm1, %v3979_v25 }
 0x199   : > { %1641 = vmatmul.mubr.bf16.gmra.mxu1 %v1467_v44 }
 0x19a   : > { %1957 = vmatprep.mubr.bf16.mxu1 %v5242_v38 }
 0x1a1   : > { %1958 = vmatmul.mubr.bf16.vlgmr.msra.gmra.mxu1 %v4613_v47  ;;  %v1129_v47 = vadd.f32 %v1128_v22, %v4419_v11  ;;  %v3855_v11 = vld [vmem:[%s5204_s5 + $0x38] sm:$0xff]  }
 0x1a2   : > { %1967 = vmatprep.mubr.bf16.mxu1 %v5242_v38  ;;  %3490 = vmatpush3.bf16.msra.mxu1 %v3855_v11 }
 0x1a3   : > { %v1312_v56 = vadd.f32 %v1311_v34, %v1129_v47  ;;  %3491 = vmatprep.subr.bf16.mxu1 %v3979_v25 }
 0x1a5   : > { %v1374_v15 = vmax.f32 %v1312_v56, 0.0 }
 0x1a6   : > { %3492 = vmatpush3.bf16.msra.mxu1 %v3857_v18 }
 0x1a7   : > { %3493 = vmatprep.subr.bf16.mxu1 %v3979_v25 }
 0x1a9   : > { %1968 = vmatmul.mubr.bf16.gmra.mxu1 %v4647_v50  ;;  %v1375_v50 = vmax.f32 %v1314_v5, 0.0 }
 0x1aa   : > { %1977 = vmatprep.mubr.bf16.mxu1 %v5242_v38 }
 0x1ab   : > { %v1405_v13 = vmax.f32 %v1374_v15, %v1375_v50 }
 0x1ad   : > { %v1420_v16 = vmax.f32 %v4535_v17, %v1405_v13  ;;  %v3858_v17 = vld [vmem:[%s5204_s5 + $0x68] sm:$0xff]  }
 0x1af   : > { %v1844_v49 = vpack.c.bf16 %v1420_v16, %v1420_v16 }
 0x1b1   : > { %1978 = vmatmul.mubr.bf16.gmra.mxu1 %v4686_v2  ;;  %v3854_v2 = vld [vmem:[%s5204_s5 + $0x78] sm:$0xff]  }
 0x1b2   : > { %1987 = vmatprep.mubr.bf16.mxu1 %v5242_v38  ;;  %3470 = vmatpush3.bf16.msra.mxu0 %v3854_v2 }
 0x1b3   : > { %3471 = vmatprep.subr.bf16.mxu0 %v3979_v25 }
 0x1b6   : > { %3472 = vmatpush3.bf16.msra.mxu0 %v3856_v39 }
 0x1b7   : > { %3473 = vmatprep.subr.bf16.mxu0 %v3979_v25 }
 0x1b9   : > { %1988 = vmatmul.mubr.bf16.gmra.mxu1 %v1441_v55 }
 0x1ba   : > { %1997 = vmatprep.mubr.bf16.mxu1 %v5242_v38  ;;  %3474 = vmatpush3.bf16.msra.mxu0 %v3858_v17 }
 0x1bb   : > { %3475 = vmatprep.subr.bf16.mxu0 %v3979_v25 }
 0x1be   : > { %3476 = vmatpush3.bf16.msra.mxu0 %v3860_v14 }
 0x1bf   : > { %3477 = vmatprep.subr.bf16.mxu0 %v3979_v25 }
 0x1c1   : > { %1998 = vmatmul.mubr.bf16.gmra.mxu1 %v1442_v36 }
 0x1c2   : > { %2007 = vmatprep.mubr.bf16.mxu1 %v5242_v38  ;;  %3478 = vmatpush3.bf16.msra.mxu0 %v3862_v58 }
 0x1c3   : > { %3479 = vmatprep.subr.bf16.mxu0 %v3979_v25 }
 0x1c6   : > { %3480 = vmatpush3.bf16.msra.mxu0 %v3864_v26 }
 0x1c7   : > { %3481 = vmatprep.subr.bf16.mxu0 %v3979_v25 }
 0x1c9   : > { %2008 = vmatmul.mubr.bf16.gmra.mxu1 %v1843_v57 }
 0x1ca   : > { %2017 = vmatprep.mubr.bf16.mxu1 %v5242_v38  ;;  %v3859_v38 = vld [vmem:[%s5204_s5 + $0x28] sm:$0xff]   ;;  %3482 = vmatpush3.bf16.msra.mxu0 %v3867_v12 }
 0x1cb   : > { %3494 = vmatpush3.bf16.msra.mxu1 %v3859_v38  ;;  %3483 = vmatprep.subr.bf16.mxu0 %v3979_v25 }
 0x1cc   : > { %3495 = vmatprep.subr.bf16.mxu1 %v3979_v25 }
 0x1ce   : > { %3484 = vmatpush3.bf16.msra.mxu0 %v3870_v54 }
 0x1cf   : > { %3496 = vmatpush3.bf16.msra.mxu1 %v3861_v20  ;;  %3509 = vmatprep.subr.bf16.mxu0 %v3979_v25 }
 0x1d0   : > { %3497 = vmatprep.subr.bf16.mxu1 %v3979_v25 }
 0x1d1   : > { %2018 = vmatmul.mubr.bf16.gmra.mxu1 %v1844_v49 }
 0x1d2   : > { %3505 = vmatprep.mubr.msk.bf16.mxu1 %vm3980_vm1, %v3979_v25 }
 0x1d3   : > { %3498 = vmatpush3.bf16.msra.mxu1 %v3863_v9 }
 0x1d4   : > { %3499 = vmatprep.subr.bf16.mxu1 %v3979_v25 }
 0x1d7   : > { %3500 = vmatpush3.bf16.msra.mxu1 %v3865_v62 }
 0x1d8   : > { %3501 = vmatprep.subr.bf16.mxu1 %v3979_v25 }
 0x1db   : > { %3502 = vmatpush3.bf16.msra.mxu1 %v3866_v0 }
 0x1dc   : > { %3503 = vmatprep.subr.bf16.mxu1 %v3979_v25 }
 0x1df   : > { %3504 = vmatpush3.bf16.msra.mxu1 %v3868_v10 }
 0x1e0   : > { %3529 = vmatprep.subr.bf16.mxu1 %v3979_v25 }
 0x224   : > { %v4808_v55 = vpop.f32.mrf.mxu0 }
 0x226   : > { %v4810_v46 = vpop.f32.mrf.mxu0 }
 0x228   : > { %v4812_v52 = vpop.f32.mrf.mxu1  ;;  %v4814_v27 = vpop.f32.mrf.mxu0 }
 0x22a   : > { %v4816_v3 = vpop.f32.mrf.mxu1  ;;  %v4818_v48 = vpop.f32.mrf.mxu0 }
 0x22c   : > { %v4820_v40 = vpop.f32.mrf.mxu1 }
 0x22d   : > { %v4822_v51 = vpop.f32.mrf.mxu0 }
 0x22e   : > { %v4824_v29 = vpop.f32.mrf.mxu1 }
 0x22f   : > { %v4826_v41 = vpop.f32.mrf.mxu0 }
 0x231   : > { %v4828_v43 = vpop.f32.mrf.mxu1  ;;  %v4830_v1 = vpop.f32.mrf.mxu0 }
 0x233   : > { %v4832_v23 = vpop.f32.mrf.mxu1  ;;  %v4834_v63 = vpop.f32.mrf.mxu0 }
 0x235   : > { %v4836_v53 = vpop.f32.mrf.mxu1  ;;  %v1781_v32 = vpop.f32.mrf.mxu0 }
 0x237   : > { %v4838_v19 = vpop.f32.mrf.mxu1  ;;  %v1783_v28 = vpop.f32.mrf.mxu0 }
 0x239   : > { %v1602_v33 = vpop.f32.mrf.mxu1  ;;  %v1785_v60 = vpop.f32.mrf.mxu0 }
 0x23a   : > { %v4840_v24 = vadd.f32 %v1781_v32, %v1602_v33 }
 0x23b   : > { %v1604_v61 = vpop.f32.mrf.mxu1  ;;  %v1787_v4 = vpop.f32.mrf.mxu0 }
 0x23c   : > { %v4842_v7 = vadd.f32 %v1783_v28, %v1604_v61 }
 0x23d   : > { %v1606_v8 = vpop.f32.mrf.mxu1  ;;  %v1791_v36 = vpop.f32.mrf.mxu0 }
 0x23e   : > { %v4844_v45 = vadd.f32 %v1785_v60, %v1606_v8 }
 0x23f   : > { %v1608_v59 = vpop.f32.mrf.mxu1  ;;  %v1793_v37 = vpop.f32.mrf.mxu0 }
 0x240   : > { %v4846_v21 = vadd.f32 %v1787_v4, %v1608_v59  ;;  %v2048_v59 = vld [vmem:[%s5203_s4] sm:$0x3] }
 0x241   : > { %v1612_v42 = vpop.f32.mrf.mxu1  ;;  %v1795_v6 = vpop.f32.mrf.mxu0 }
 0x242   : > { %v4848_v44 = vadd.f32 %v1791_v36, %v1612_v42 }
 0x243   : > { %v1614_v22 = vpop.f32.mrf.mxu1  ;;  %v4850_v31 = vpop.f32.mrf.mxu0 }
 0x244   : > { %v4852_v34 = vadd.f32 %v1793_v37, %v1614_v22  ;;  %v1762_v37 = vadd.f32 %v4808_v55, %v4812_v52  ;;  %v5262_v22 = vld [vmem:[#allocation7_spill] sm:$0xff]  ;;  %v1768_v55 = vadd.f32 %v4818_v48, %v4824_v29  ;;  %v1776_v48 = vadd.f32 %v4830_v1, %v4836_v53 }
 0x245   : > { %v1616_v30 = vpop.f32.mrf.mxu1  ;;  %v1801_v47 = vpop.f32.mrf.mxu0 }
 0x246   : > { %v4854_v35 = vadd.f32 %v1795_v6, %v1616_v30  ;;  %v1764_v6 = vadd.f32 %v4810_v46, %v4816_v3  ;;  %v5263_v30 = vsub.s32 1, %v5262_v22 }
 0x247   : > { %v4856_v5 = vpop.f32.mrf.mxu1  ;;  %v1803_v56 = vpop.f32.mrf.mxu0 }
 0x249   : > { %v1622_v50 = vpop.f32.mrf.mxu1  ;;  %v1805_v2 = vpop.f32.mrf.mxu0 }
 0x24a   : > { %v4858_v15 = vadd.f32 %v1801_v47, %v1622_v50  ;;  %v4883_v47 = vrot.slane %v2048_v59, %v5263_v30  ;;  %v5264_v50 = vsub.s32 0, %v5262_v22 }
 0x24b   : > { %v1624_v11 = vpop.f32.mrf.mxu1  ;;  %v1807_v13 = vpop.f32.mrf.mxu0 }
 0x24c   : > { %v4860_v57 = vadd.f32 %v1803_v56, %v1624_v11 }
 0x24d   : > { %v1626_v16 = vpop.f32.mrf.mxu1  ;;  %v1811_v39 = vpop.f32.mrf.mxu0 }
 0x24e   : > { %v4862_v18 = vadd.f32 %v1805_v2, %v1626_v16  ;;  %v4887_v2 = vrot.slane %v2048_v59, %v5264_v50 }
 0x24f   : > { %v1628_v49 = vpop.f32.mrf.mxu1  ;;  %v1813_v17 = vpop.f32.mrf.mxu0 }
 0x250   : > { %v4864_v38 = vadd.f32 %v1807_v13, %v1628_v49  ;;  %v1766_v13 = vadd.f32 %v4814_v27, %v4820_v40  ;;  %v1774_v27 = vadd.f32 %v4826_v41, %v4832_v23 }
 0x251   : > { %v1632_v14 = vpop.f32.mrf.mxu1  ;;  %v1815_v20 = vpop.f32.mrf.mxu0 }
 0x252   : > { %v4866_v58 = vadd.f32 %v1811_v39, %v1632_v14 }
 0x253   : > { %v1634_v9 = vpop.f32.mrf.mxu1  ;;  %v1817_v62 = vpop.f32.mrf.mxu0 }
 0x254   : > { %v4868_v0 = vadd.f32 %v1813_v17, %v1634_v9  ;;  %v1772_v9 = vadd.f32 %v4822_v51, %v4828_v43 }
 0x255   : > { %v1636_v26 = vpop.f32.mrf.mxu1  ;;  %v1821_v10 = vpop.f32.mrf.mxu0 }
 0x256   : > { %v4870_v12 = vadd.f32 %v1815_v20, %v1636_v26 }
 0x257   : > { %v1638_v54 = vpop.f32.mrf.mxu1  ;;  %v1822_v32 = vpop.f32.mrf.mxu0 }
 0x258   : > { %v4872_v28 = vadd.f32 %v1817_v62, %v1638_v54 }
 0x259   : > { %v1642_v33 = vpop.f32.mrf.mxu1  ;;  %v1823_v60 = vpop.f32.mrf.mxu0 }
 0x25a   : > { %v1778_v60 = vadd.f32 %v4834_v63, %v4838_v19 }
 0x25b   : > { %v1643_v61 = vpop.f32.mrf.mxu1  ;;  %v1824_v4 = vpop.f32.mrf.mxu0 }
 0x25d   : > { %v1644_v8 = vpop.f32.mrf.mxu1 }
 0x25f   : > { %v1645_v36 = vpop.f32.mrf.mxu1 }
 0x261   : > { %v1959_v42 = vpop.f32.mrf.mxu1 }
 0x262   : > { %v2024_v56 = vadd.f32 %v1959_v42, %v1762_v37  ;;  %v3869_v37 = vld [vmem:[%s5204_s5 + $0xf8] sm:$0xff]  }
 0x263   : > { %v1961_v11 = vpop.f32.mrf.mxu1 }
 0x264   : > { %v2025_v16 = vadd.f32 %v1961_v11, %v1764_v6  ;;  %v2060_v3 = vadd.f32 %v4887_v2, %v2024_v56 }
 0x265   : > { %v1963_v39 = vpop.f32.mrf.mxu1 }
 0x266   : > { %v2061_v46 = vadd.f32 %v4883_v47, %v2025_v16  ;;  %v2026_v52 = vadd.f32 %v1963_v39, %v1766_v13  ;;  %v2084_v29 = vmax.f32 %v2060_v3, 0.0  ;;  %v3871_v39 = vld [vmem:[%s5204_s5 + $0xf0] sm:$0xff]  }
 0x267   : > { %v1965_v49 = vpop.f32.mrf.mxu1 }
 0x268   : > { %v2062_v17 = vadd.f32 %v4887_v2, %v2026_v52  ;;  %v2027_v14 = vadd.f32 %v1965_v49, %v1768_v55  ;;  %v2085_v40 = vmax.f32 %v2061_v46, 0.0 }
 0x269   : > { %v1969_v20 = vpop.f32.mrf.mxu1 }
 0x26a   : > { %v2063_v62 = vadd.f32 %v4883_v47, %v2027_v14  ;;  %v2086_v10 = vmax.f32 %v2062_v17, 0.0  ;;  %v2028_v32 = vadd.f32 %v1969_v20, %v1772_v9  ;;  %v2108_v51 = vmax.f32 %v2084_v29, %v2085_v40 }
 0x26b   : > { %v1971_v26 = vpop.f32.mrf.mxu1 }
 0x26c   : > { %v2087_v54 = vmax.f32 %v2063_v62, 0.0  ;;  %v2029_v33 = vadd.f32 %v1971_v26, %v1774_v27  ;;  %v2064_v36 = vadd.f32 %v4887_v2, %v2028_v32  ;;  %v3872_v27 = vld [vmem:[%s5204_s5 + $0xb8] sm:$0xff]   ;;  %v1798_v32 = vadd.f32 %v4850_v31, %v4856_v5 }
 0x26d   : > { %v1973_v61 = vpop.f32.mrf.mxu1 }
 0x26e   : > { %v2109_v43 = vmax.f32 %v2086_v10, %v2087_v54  ;;  %v2065_v41 = vadd.f32 %v4883_v47, %v2029_v33  ;;  %v2030_v23 = vadd.f32 %v1973_v61, %v1776_v48  ;;  %v2088_v30 = vmax.f32 %v2064_v36, 0.0  ;;  %v3874_v61 = vld [vmem:[%s5204_s5 + $0xb0] sm:$0xff]  }
 0x26f   : > { %v1975_v4 = vpop.f32.mrf.mxu1 }
 0x270   : > { %v2120_v8 = vmax.f32 %v2108_v51, %v2109_v43  ;;  %v2066_v1 = vadd.f32 %v4887_v2, %v2030_v23  ;;  %v2031_v53 = vadd.f32 %v1975_v4, %v1778_v60  ;;  %v2089_v63 = vmax.f32 %v2065_v41, 0.0 }
 0x271   : > { %v1979_v59 = vpop.f32.mrf.mxu1 }
 0x272   : > { %v2137_v42 = vpack.c.bf16 %v2120_v8, %v2120_v8  ;;  %v2067_v19 = vadd.f32 %v4883_v47, %v2031_v53  ;;  %v2032_v6 = vadd.f32 %v1979_v59, %v4840_v24  ;;  %v2090_v56 = vmax.f32 %v2066_v1, 0.0  ;;  %v3877_v1 = vld [vmem:[%s5204_s5 + $0xd8] sm:$0xff]  }
 0x273   : > { %v1981_v22 = vpop.f32.mrf.mxu1  ;;  %v2110_v55 = vmax.f32 %v2088_v30, %v2089_v63 }
 0x274   : > { %v2091_v50 = vmax.f32 %v2067_v19, 0.0  ;;  %v2033_v11 = vadd.f32 %v1981_v22, %v4842_v7  ;;  %3506 = vmatmul.mubr.bf16.vlgmr.msra.gmra.mxu1 %v2137_v42  ;;  %v2068_v13 = vadd.f32 %v4887_v2, %v2032_v6 }
 0x275   : > { %3530 = vmatpush3.bf16.msra.mxu1 %v3869_v37  ;;  %v1983_v16 = vpop.f32.mrf.mxu1  ;;  %3545 = vmatprep.mubr.msk.bf16.mxu1 %vm3980_vm1, %v3979_v25 }
 0x276   : > { %v2111_v24 = vmax.f32 %v2090_v56, %v2091_v50  ;;  %v2069_v46 = vadd.f32 %v4883_v47, %v2033_v11  ;;  %v2034_v52 = vadd.f32 %v1983_v16, %v4844_v45  ;;  %3531 = vmatprep.subr.bf16.mxu1 %v3979_v25  ;;  %v2092_v7 = vmax.f32 %v2068_v13, 0.0  ;;  %v3873_v45 = vld [vmem:[%s5204_s5 + $0xe8] sm:$0xff]   ;;  %v3878_v56 = vld [vmem:[%s5204_s5 + $0xa0] sm:$0xff]  }
 0x277   : > { %v1985_v3 = vpop.f32.mrf.mxu1 }
 0x278   : > { %v2138_v49 = vmax.f32 %v2110_v55, %v2111_v24  ;;  %v2093_v17 = vmax.f32 %v2069_v46, 0.0  ;;  %v2070_v14 = vadd.f32 %v4887_v2, %v2034_v52  ;;  %v2035_v20 = vadd.f32 %v1985_v3, %v4846_v21 }
 0x279   : > { %3532 = vmatpush3.bf16.msra.mxu1 %v3871_v39  ;;  %v1989_v9 = vpop.f32.mrf.mxu1 }
 0x27a   : > { %v2156_v40 = vpack.c.bf16 %v2138_v49, %v2138_v49  ;;  %v2112_v62 = vmax.f32 %v2092_v7, %v2093_v17  ;;  %v2071_v48 = vadd.f32 %v4883_v47, %v2035_v20  ;;  %3533 = vmatprep.subr.bf16.mxu1 %v3979_v25  ;;  %v2036_v29 = vadd.f32 %v1989_v9, %v4848_v44  ;;  %v3875_v44 = vld [vmem:[%s5204_s5 + $0xe0] sm:$0xff]   ;;  %v3880_v7 = vld [vmem:[%s5204_s5 + $0x98] sm:$0xff]  }
 0x27b   : > { %v1991_v26 = vpop.f32.mrf.mxu1  ;;  %v2094_v21 = vmax.f32 %v2070_v14, 0.0 }
 0x27c   : > { %v2095_v10 = vmax.f32 %v2071_v48, 0.0  ;;  %v2037_v54 = vadd.f32 %v1991_v26, %v4852_v34  ;;  %3486 = vmatmul.mubr.bf16.vlgmr.msra.gmra.mxu0 %v2156_v40  ;;  %v2072_v33 = vadd.f32 %v4887_v2, %v2036_v29  ;;  %v3882_v40 = vld [vmem:[%s5204_s5 + $0x90] sm:$0xff]  }
 0x27d   : > { %3510 = vmatpush3.bf16.msra.mxu0 %v3872_v27  ;;  %3534 = vmatpush3.bf16.msra.mxu1 %v3873_v45  ;;  %v1993_v60 = vpop.f32.mrf.mxu1 }
 0x27e   : > { %v2113_v51 = vmax.f32 %v2094_v21, %v2095_v10  ;;  %v2073_v34 = vadd.f32 %v4883_v47, %v2037_v54  ;;  %v2038_v43 = vadd.f32 %v1993_v60, %v4854_v35  ;;  %3511 = vmatprep.subr.bf16.mxu0 %v3979_v25  ;;  %3535 = vmatprep.subr.bf16.mxu1 %v3979_v25  ;;  %v2096_v31 = vmax.f32 %v2072_v33, 0.0  ;;  %v3876_v35 = vld [vmem:[%s5204_s5 + $0xa8] sm:$0xff]   ;;  %v3885_v60 = vld [vmem:[%s5204_s5 + $0x178] sm:$0xff]  }
 0x27f   : > { %v1995_v5 = vpop.f32.mrf.mxu1  ;;  %3525 = vmatprep.mubr.msk.bf16.mxu0 %vm3980_vm1, %v3979_v25 }
 0x280   : > { %v4950_v41 = vmax.f32 %v2112_v62, %v2113_v51  ;;  %v2097_v23 = vmax.f32 %v2073_v34, 0.0  ;;  %v2074_v4 = vadd.f32 %v4887_v2, %v2038_v43  ;;  %v2039_v8 = vadd.f32 %v1995_v5, %v1798_v32  ;;  %v3883_v62 = vld [vmem:[%s5204_s5 + $0xc0] sm:$0xff]   ;;  %v3887_v5 = vld [vmem:[%s5204_s5 + $0x170] sm:$0xff]  }
 0x281   : > { %3512 = vmatpush3.bf16.msra.mxu0 %v3874_v61  ;;  %3536 = vmatpush3.bf16.msra.mxu1 %v3875_v44  ;;  %v1999_v36 = vpop.f32.mrf.mxu1 }
 0x282   : > { %v2114_v53 = vmax.f32 %v2096_v31, %v2097_v23  ;;  %v2075_v59 = vadd.f32 %v4883_v47, %v2039_v8  ;;  %v2040_v37 = vadd.f32 %v1999_v36, %v4858_v15  ;;  %3513 = vmatprep.subr.bf16.mxu0 %v3979_v25  ;;  %3537 = vmatprep.subr.bf16.mxu1 %v3979_v25  ;;  %v2098_v63 = vmax.f32 %v2074_v4, 0.0  ;;  %v3879_v15 = vld [vmem:[%s5204_s5 + $0xd0] sm:$0xff]   ;;  %v3886_v31 = vld [vmem:[%s5204_s5 + $0x80] sm:$0xff]   ;;  %v3888_v8 = vld [vmem:[%s5204_s5 + $0x138] sm:$0xff]  }
 0x283   : > { %v2001_v42 = vpop.f32.mrf.mxu1  ;;  %v3889_v36 = vld [vmem:[%s5204_s5 + $0x168] sm:$0xff]  }
 0x284   : > { %v2099_v19 = vmax.f32 %v2075_v59, 0.0  ;;  %v2076_v6 = vadd.f32 %v4887_v2, %v2040_v37  ;;  %v2041_v22 = vadd.f32 %v2001_v42, %v4860_v57  ;;  %v3893_v59 = vld [vmem:[%s5204_s5 + $0x158] sm:$0xff]   ;;  %v3894_v37 = vld [vmem:[%s5204_s5 + $0x120] sm:$0xff]   ;;  %v3895_v42 = vld [vmem:[%s5204_s5 + $0x150] sm:$0xff]  }
 0x285   : > { %3514 = vmatpush3.bf16.msra.mxu0 %v3876_v35  ;;  %3538 = vmatpush3.bf16.msra.mxu1 %v3877_v1  ;;  %v2003_v30 = vpop.f32.mrf.mxu1  ;;  %v2351_v35 = vpack.c.bf16 %v4950_v41, %v4950_v41  ;;  %v3890_v1 = vld [vmem:[%s5204_s5 + $0x130] sm:$0xff]   ;;  %v3892_v41 = vld [vmem:[%s5204_s5 + $0x128] sm:$0xff]  }
 0x286   : > { %v2115_v50 = vmax.f32 %v2098_v63, %v2099_v19  ;;  %v2077_v11 = vadd.f32 %v4883_v47, %v2041_v22  ;;  %v2042_v13 = vadd.f32 %v2003_v30, %v4862_v18  ;;  %3515 = vmatprep.subr.bf16.mxu0 %v3979_v25  ;;  %3539 = vmatprep.subr.bf16.mxu1 %v3979_v25  ;;  %v2100_v57 = vmax.f32 %v2076_v6, 0.0  ;;  %v3881_v18 = vld [vmem:[%s5204_s5 + $0xc8] sm:$0xff]   ;;  %v3896_v63 = vld [vmem:[%s5204_s5 + $0x118] sm:$0xff]   ;;  %v3898_v6 = vld [vmem:[%s5204_s5 + $0x110] sm:$0xff]  }
 0x287   : > { %v2005_v16 = vpop.f32.mrf.mxu1  ;;  %v3897_v19 = vld [vmem:[%s5204_s5 + $0x148] sm:$0xff]   ;;  %v3899_v22 = vld [vmem:[%s5204_s5 + $0x140] sm:$0xff]  }
 0x288   : > { %v2441_v39 = vmax.f32 %v2114_v53, %v2115_v50  ;;  %v2101_v55 = vmax.f32 %v2077_v11, 0.0  ;;  %v2078_v24 = vadd.f32 %v4887_v2, %v2042_v13  ;;  %v2043_v46 = vadd.f32 %v2005_v16, %v4864_v38  ;;  %v3891_v53 = vld [vmem:[%s5204_s5 + $0x160] sm:$0xff]   ;;  %v3900_v30 = vld [vmem:[%s5204_s5 + $0x108] sm:$0xff]   ;;  %v3902_v11 = vld [vmem:[%s5206_s7 + $0x38] ss:$0 sps:$4 sm:$0xff]  }
 0x289   : > { %3516 = vmatpush3.bf16.msra.mxu0 %v3878_v56  ;;  %3540 = vmatpush3.bf16.msra.mxu1 %v3879_v15  ;;  %v2009_v52 = vpop.f32.mrf.mxu1  ;;  %v3901_v15 = vld [vmem:[%s5204_s5 + $0x100] sm:$0xff]   ;;  %v2848_v13 = vsel %vm2846_vm2, %v3902_v11, 0  ;;  %v3904_v16 = vld [vmem:[%s5206_s7 + $0x28] sm:$0xff]  }
 0x28a   : > { %v2116_v3 = vmax.f32 %v2100_v57, %v2101_v55  ;;  %v2079_v49 = vadd.f32 %v4883_v47, %v2043_v46  ;;  %3517 = vmatprep.subr.bf16.mxu0 %v3979_v25  ;;  %3541 = vmatprep.subr.bf16.mxu1 %v3979_v25  ;;  %v2044_v38 = vadd.f32 %v2009_v52, %v4866_v58  ;;  %v2102_v14 = vmax.f32 %v2078_v24, 0.0  ;;  %v3903_v57 = vld [vmem:[%s5206_s7 + $0x30] sm:$0xff]   ;;  %v3906_v55 = vld [vmem:[%s5206_s7 + $0x18] sm:$0xff]   ;;  %v3908_v46 = vld [vmem:[%s5206_s7 + $0x8] sm:$0xff]  }
 0x28b   : > { %v2011_v17 = vpop.f32.mrf.mxu1  ;;  %v2459_v61 = vpack.c.bf16 %v2441_v39, %v2441_v39  ;;  %v3905_v39 = vld [vmem:[%s5206_s7 + $0x20] sm:$0xff]   ;;  %v3907_v24 = vld [vmem:[%s5206_s7 + $0x10] sm:$0xff]  }
 0x28c   : > { %v2103_v20 = vmax.f32 %v2079_v49, 0.0  ;;  %v2045_v9 = vadd.f32 %v2011_v17, %v4868_v0  ;;  %v2080_v27 = vadd.f32 %v4887_v2, %v2044_v38  ;;  %v3909_v52 = vld [vmem:[%s5206_s7] sm:$0xff]   ;;  %v3912_v49 = vld [vmem:[%s5208_s9 + $0x18] sm:$0xff]   ;;  %v3913_v38 = vld [vmem:[%s5208_s9 + $0x10] sm:$0xff]  }
 0x28d   : > { %3518 = vmatpush3.bf16.msra.mxu0 %v3880_v7  ;;  %3542 = vmatpush3.bf16.msra.mxu1 %v3881_v18  ;;  %v2013_v45 = vpop.f32.mrf.mxu1  ;;  %v3910_v7 = vld [vmem:[%s5208_s9 + $0x28] ss:$0 sps:$4 sm:$0x33]  }
 0x28e   : > { %v2117_v48 = vmax.f32 %v2102_v14, %v2103_v20  ;;  %v2081_v58 = vadd.f32 %v4883_v47, %v2045_v9  ;;  %v2046_v29 = vadd.f32 %v2013_v45, %v4870_v12  ;;  %3519 = vmatprep.subr.bf16.mxu0 %v3979_v25  ;;  %3543 = vmatprep.subr.bf16.mxu1 %v3979_v25  ;;  %v2104_v0 = vmax.f32 %v2080_v27, 0.0  ;;  %v3884_v12 = vld [vmem:[%s5204_s5 + $0x88] sm:$0xff]  }
 0x28f   : > { %v2015_v26 = vpop.f32.mrf.mxu1  ;;  %v2949_v18 = vsel %vm2947_vm3, %v3910_v7, 0 }
 0x290   : > { %v4999_v21 = vmax.f32 %v2116_v3, %v2117_v48  ;;  %v2105_v10 = vmax.f32 %v2081_v58, 0.0  ;;  %v2082_v54 = vadd.f32 %v4887_v2, %v2046_v29  ;;  %v2047_v32 = vadd.f32 %v2015_v26, %v4872_v28  ;;  %v3911_v3 = vld [vmem:[%s5208_s9 + $0x20] sm:$0xff]  }
 0x291   : > { %3520 = vmatpush3.bf16.msra.mxu0 %v3882_v40  ;;  %3544 = vmatpush3.bf16.msra.mxu1 %v3883_v62  ;;  %v2019_v33 = vpop.f32.mrf.mxu1 }
 0x292   : > { %v2118_v44 = vmax.f32 %v2104_v0, %v2105_v10  ;;  %v2083_v51 = vadd.f32 %v4883_v47, %v2047_v32  ;;  %3521 = vmatprep.subr.bf16.mxu0 %v3979_v25  ;;  %3569 = vmatprep.subr.bf16.mxu1 %v3979_v25  ;;  %v2106_v2 = vmax.f32 %v2082_v54, 0.0  ;;  %v2567_v50 = vpack.c.bf16 %v4999_v21, %v4999_v21 }
 0x293   : > { %v2020_v28 = vpop.f32.mrf.mxu1 }
 0x294   : > { %v2107_v34 = vmax.f32 %v2083_v51, 0.0  ;;  %3546 = vmatmul.mubr.bf16.vlgmr.msra.gmra.mxu1 %v2459_v61 }
 0x295   : > { %3522 = vmatpush3.bf16.msra.mxu0 %v3884_v12  ;;  %3570 = vmatpush3.bf16.msra.mxu1 %v3885_v60  ;;  %v2021_v43 = vpop.f32.mrf.mxu1 }
 0x296   : > { %v2119_v47 = vmax.f32 %v2106_v2, %v2107_v34  ;;  %3523 = vmatprep.subr.bf16.mxu0 %v3979_v25  ;;  %3571 = vmatprep.subr.bf16.mxu1 %v3979_v25  ;;  %v3376_v34 = vld [vmem:[%s5205_s6] ss:$0 sm:$0xff] }
 0x297   : > { %v2022_v23 = vpop.f32.mrf.mxu1  ;;  %3585 = vmatprep.mubr.msk.bf16.mxu1 %vm3980_vm1, %v3979_v25 }
 0x298   : > { %v2657_v4 = vmax.f32 %v2118_v44, %v2119_v47 }
 0x299   : > { %3524 = vmatpush3.bf16.msra.mxu0 %v3886_v31  ;;  %3572 = vmatpush3.bf16.msra.mxu1 %v3887_v5 }
 0x29a   : > { %3549 = vmatprep.subr.bf16.mxu0 %v3979_v25  ;;  %3573 = vmatprep.subr.bf16.mxu1 %v3979_v25  ;;  %v2675_v56 = vpack.c.bf16 %v2657_v4, %v2657_v4 }
 0x29c   : > { %3526 = vmatmul.mubr.bf16.vlgmr.msra.gmra.mxu0 %v2351_v35  ;;  %v3915_v35 = vld [vmem:[%s5208_s9] sm:$0xff]  }
 0x29d   : > { %3550 = vmatpush3.bf16.msra.mxu0 %v3888_v8  ;;  %3574 = vmatpush3.bf16.msra.mxu1 %v3889_v36  ;;  %v3914_v36 = vld [vmem:[%s5208_s9 + $0x8] sm:$0xff]  }
 0x29e   : > { %3551 = vmatprep.subr.bf16.mxu0 %v3979_v25  ;;  %3575 = vmatprep.subr.bf16.mxu1 %v3979_v25 }
 0x29f   : > { %3565 = vmatprep.mubr.msk.bf16.mxu0 %vm3980_vm1, %v3979_v25 }
 0x2a1   : > { %3552 = vmatpush3.bf16.msra.mxu0 %v3890_v1  ;;  %3576 = vmatpush3.bf16.msra.mxu1 %v3891_v53  ;;  %v3377_v1 = vld [vmem:[%s5207_s8] ss:$0 sm:$0xff] }
 0x2a2   : > { %3553 = vmatprep.subr.bf16.mxu0 %v3979_v25  ;;  %3577 = vmatprep.subr.bf16.mxu1 %v3979_v25 }
 0x2a5   : > { %3554 = vmatpush3.bf16.msra.mxu0 %v3892_v41  ;;  %3578 = vmatpush3.bf16.msra.mxu1 %v3893_v59 }
 0x2a6   : > { %3555 = vmatprep.subr.bf16.mxu0 %v3979_v25  ;;  %3579 = vmatprep.subr.bf16.mxu1 %v3979_v25 }
 0x2a9   : > { %3556 = vmatpush3.bf16.msra.mxu0 %v3894_v37  ;;  %3580 = vmatpush3.bf16.msra.mxu1 %v3895_v42 }
 0x2aa   : > { %3557 = vmatprep.subr.bf16.mxu0 %v3979_v25  ;;  %3581 = vmatprep.subr.bf16.mxu1 %v3979_v25 }
 0x2ad   : > { %3558 = vmatpush3.bf16.msra.mxu0 %v3896_v63  ;;  %3582 = vmatpush3.bf16.msra.mxu1 %v3897_v19 }
 0x2ae   : > { %3559 = vmatprep.subr.bf16.mxu0 %v3979_v25  ;;  %3583 = vmatprep.subr.bf16.mxu1 %v3979_v25 }
 0x2b1   : > { %3560 = vmatpush3.bf16.msra.mxu0 %v3898_v6  ;;  %3584 = vmatpush3.bf16.msra.mxu1 %v3899_v22 }
 0x2b2   : > { %3561 = vmatprep.subr.bf16.mxu0 %v3979_v25  ;;  %3609 = vmatprep.subr.bf16.mxu1 %v3979_v25 }
 0x2b4   : > { %3586 = vmatmul.mubr.bf16.vlgmr.msra.gmra.mxu1 %v2675_v56 }
 0x2b5   : > { %3562 = vmatpush3.bf16.msra.mxu0 %v3900_v30  ;;  %3621 = vmatprep.mubr.msk.bf16.mxu1 %vm3980_vm1, %v3979_v25 }
 0x2b6   : > { %3563 = vmatprep.subr.bf16.mxu0 %v3979_v25  ;;  %3610 = vmatpush3.bf16.msra.mxu1 %v2949_v18 }
 0x2b7   : > { %3611 = vmatprep.subr.bf16.mxu1 %v3979_v25 }
 0x2b9   : > { %3564 = vmatpush3.bf16.msra.mxu0 %v3901_v15 }
 0x2ba   : > { %3589 = vmatprep.subr.bf16.mxu0 %v3979_v25  ;;  %3612 = vmatpush3.bf16.msra.mxu1 %v3911_v3 }
 0x2bb   : > { %3613 = vmatprep.subr.bf16.mxu1 %v3979_v25 }
 0x2bc   : > { %3566 = vmatmul.mubr.bf16.vlgmr.msra.gmra.mxu0 %v2567_v50 }
 0x2bd   : > { %3605 = vmatprep.mubr.msk.bf16.mxu0 %vm3980_vm1, %v3979_v25  ;;  %3590 = vmatpush3.bf16.msra.mxu0 %v2848_v13 }
 0x2be   : > { %3591 = vmatprep.subr.bf16.mxu0 %v3979_v25  ;;  %3614 = vmatpush3.bf16.msra.mxu1 %v3912_v49 }
 0x2bf   : > { %3615 = vmatprep.subr.bf16.mxu1 %v3979_v25 }
 0x2c1   : > { %3592 = vmatpush3.bf16.msra.mxu0 %v3903_v57 }
 0x2c2   : > { %3593 = vmatprep.subr.bf16.mxu0 %v3979_v25  ;;  %3616 = vmatpush3.bf16.msra.mxu1 %v3913_v38 }
 0x2c3   : > { %3617 = vmatprep.subr.bf16.mxu1 %v3979_v25 }
 0x2c5   : > { %3594 = vmatpush3.bf16.msra.mxu0 %v3904_v16 }
 0x2c6   : > { %3595 = vmatprep.subr.bf16.mxu0 %v3979_v25  ;;  %3618 = vmatpush3.bf16.msra.mxu1 %v3914_v36 }
 0x2c7   : > { %3619 = vmatprep.subr.bf16.mxu1 %v3979_v25 }
 0x2c9   : > { %3596 = vmatpush3.bf16.msra.mxu0 %v3905_v39 }
 0x2ca   : > { %3597 = vmatprep.subr.bf16.mxu0 %v3979_v25  ;;  %3620 = vmatpush3.bf16.msra.mxu1 %v3915_v35 }
 0x2cd   : > { %3598 = vmatpush3.bf16.msra.mxu0 %v3906_v55 }
 0x2ce   : > { %3599 = vmatprep.subr.bf16.mxu0 %v3979_v25 }
 0x2d1   : > { %3600 = vmatpush3.bf16.msra.mxu0 %v3907_v24 }
 0x2d2   : > { %3601 = vmatprep.subr.bf16.mxu0 %v3979_v25 }
 0x2d5   : > { %3602 = vmatpush3.bf16.msra.mxu0 %v3908_v46 }
 0x2d6   : > { %3603 = vmatprep.subr.bf16.mxu0 %v3979_v25  ;;  %v3387_v25 = vld [vmem:[%s5209_s10] ss:$0 sm:$0xff] }
 0x2d9   : > { %3604 = vmatpush3.bf16.msra.mxu0 %v3909_v52 }
 0x334   : > { %v2327_v17 = vpop.f32.mrf.mxu1 }
 0x336   : > { %v3507_v14 = vpop.f32.mrf.mxu1 }
 0x338   : > { %v2330_v20 = vpop.f32.mrf.mxu1 }
 0x33a   : > { %v3508_v9 = vpop.f32.mrf.mxu1 }
 0x33c   : > { %v2239_v27 = vpop.f32.mrf.mxu0 }
 0x33d   : > { %v2328_v33 = vadd.f32 %v2327_v17, %v2239_v27 }
 0x33e   : > { %v3487_v45 = vpop.f32.mrf.mxu0 }
 0x340   : > { %v2242_v40 = vpop.f32.mrf.mxu0 }
 0x342   : > { %v3488_v62 = vpop.f32.mrf.mxu0 }
 0x354   : > { %v2542_v48 = vpop.f32.mrf.mxu1 }
 0x356   : > { %v3547_v58 = vpop.f32.mrf.mxu1 }
 0x358   : > { %v2545_v29 = vpop.f32.mrf.mxu1 }
 0x35a   : > { %v3548_v0 = vpop.f32.mrf.mxu1 }
 0x35c   : > { %v2434_v26 = vpop.f32.mrf.mxu0 }
 0x35d   : > { %v2440_v60 = vadd.f32 %v2434_v26, %v2328_v33 }
 0x35e   : > { %v3527_v21 = vpop.f32.mrf.mxu0 }
 0x35f   : > { %v2548_v51 = vadd.f32 %v2542_v48, %v2440_v60 }
 0x360   : > { %v2437_v10 = vpop.f32.mrf.mxu0 }
 0x362   : > { %v3528_v54 = vpop.f32.mrf.mxu0 }
 0x374   : > { %v2758_v32 = vpop.f32.mrf.mxu1 }
 0x376   : > { %v3587_v12 = vpop.f32.mrf.mxu1 }
 0x378   : > { %v2761_v61 = vpop.f32.mrf.mxu1 }
 0x37a   : > { %v3588_v44 = vpop.f32.mrf.mxu1 }
 0x37c   : > { %v2650_v28 = vpop.f32.mrf.mxu0 }
 0x37d   : > { %v2656_v2 = vadd.f32 %v2650_v28, %v2548_v51 }
 0x37e   : > { %v3567_v43 = vpop.f32.mrf.mxu0 }
 0x37f   : > { %v2764_v31 = vadd.f32 %v2758_v32, %v2656_v2 }
 0x380   : > { %v2653_v5 = vpop.f32.mrf.mxu0 }
 0x381   : > { %v2772_v47 = vadd.f32 %v3376_v34, %v2764_v31 }
 0x382   : > { %v3568_v23 = vpop.f32.mrf.mxu0 }
 0x383   : > { %v2773_v4 = vmax.f32 %v2772_v47, 0.0 }
 0x385   : > { %v2789_v8 = vpack.c.bf16 %v2773_v4, %v2773_v4 }
 0x387   : > { %3606 = vmatmul.mubr.msk.bf16.vlgmr.msra.gmra.mxu0 %vm2842_vm4, %v2789_v8 }
 0x447   : > { %v2884_v53 = vpop.f32.mrf.mxu0 }
 0x448   : > { %v2885_v41 = vadd.f32 %v3377_v1, %v2884_v53 }
 0x449   : > { %v3607_v59 = vpop.f32.mrf.mxu0 }
 0x44a   : > { %v2890_v37 = vmax.f32 %v2885_v41, 0.0 }
 0x44b   : > { %v2887_v42 = vpop.f32.mrf.mxu0 }
 0x44c   : > { %v2902_v63 = vpack.c.bf16 %v2890_v37, %v2890_v37 }
 0x44d   : > { %v3608_v19 = vpop.f32.mrf.mxu0 }
 0x44e   : > { %3622 = vmatmul.mubr.msk.bf16.vlgmr.msra.gmra.mxu1 %vm2943_vm5, %v2902_v63 }
 0x50e   : > { %v2985_v6 = vpop.f32.mrf.mxu1 }
 0x50f   : > { %v2986_v22 = vadd.f32 %v3387_v25, %v2985_v6 }
 0x510   : > { %v3623_v30 = vpop.f32.mrf.mxu1 }
 0x511   : > { %2992 = vst.msk [vmem:[%s382_s24] sm:$0xff] %vm2991_vm6, %v2986_v22 }
 0x512   : > { %v2988_v56 = vpop.f32.mrf.mxu1 }
 0x513   : > { %3929 = shalt.err (!%p3926_p3)
}
 0x514   : > { %s3930_s19 = scalar_lea.hbm %s5158_s29, 128  ;;  %s3934_s24 = scalar_lea.hbm %s5210_s11, 256 }
 0x515   : > { %p3931_p4 = scmp.ne.s32.totalorder %s5158_s29, %s3930_s19  ;;  %p3935_p9 = scmp.lt.s32.totalorder %s5158_s29, %s5210_s11 }
 0x516   : > { %p3936_p10 = scmp.lt.s32.totalorder %s3934_s24, %s3930_s19 }
 0x517   : > { %p3932_p7 = pnand %p3931_p4, %p4080_p5 }
 0x518   : > { %p3937_p11 = por %p3936_p10, %p3935_p9 }
 0x519   : > { %p3933_p8 = pneg %p3932_p7 }
 0x51b   : > { %p3938_p12 = pnand %p3937_p11, %p3933_p8 }
 0x51d   : > { %3941 = shalt.err (!%p3938_p12)
}
 0x51e   : > { %3626 = dma.vmem_to_hbm [thread:$0]  (%p4080_p5), %s5160_s25, 128, %s5158_s29, %s2994_s12   ;;  %v3624_v15 = vpop.f32.mrf.mxu1 }
 0x51f PF: > { %p3632_p13 = scmp.ge.s32.totalorder %s3976_s20, 2  ;;  %s3019_s21 = sand.u32 1, %s3964_s17  }
 0x520   : > { %s3020_s13 = scalar_lea.sflag [#allocation3], %s3019_s21 }
 0x521   : > { %p3629_p0 = pnand %p3632_p13, %p4084_p6 }
 0x523   : > { %p3630_p1 = pneg %p3629_p0 }
 0x525   : > { %3959 = dma.done.wait (%p3630_p1), %s3020_s13, 128  }
 0x526   : > { %3961 = vsyncadd (%p3630_p1), %s3020_s13, 4294967168  ;;  %s5265_s26 = sld [smem:[#allocation5_spill]]  ;;  %p21_p2 = scmp.ge.s32.totalorder %s4067_s23, 4  }
 0x527   : > { %s5266_s19 = sld [smem:[#allocation6_spill]]  ;;  %s5267_s17 = smov %s3968_s18 }
 0x528   : > { %s5269_s20 = smov %s4067_s23  ;;  %23 = sbr.rel (!%p21_p2) target bundleno = 3 (0x3), region = 106 }
 0x52c   : > { %s5268_s18 = smov %s5265_s26 }
 0x52d   :  { %3025 = vsyncpa [#allocation3], 1 }
 0x52e   :  { %3027 = vsyncpa [#allocation3 + $0x1], 1 }

</bundles_post_ra>
